<compile_context>
chip_gen: v7x
topology: tpu7x:2x2x1
jax: 0.10.0
libtpu: 0.0.40
codegen_flags: <defaults>
</compile_context>

<pallas_src>
import functools
import jax
import jax.numpy as jnp
from jax.experimental import pallas as pl
from jax.experimental.pallas import tpu as pltpu


# ----------------------------------------------------------------------------
# Pallas kernel: tiled matmul with fused bias / residual / ReLU epilogue
# ----------------------------------------------------------------------------
def _matmul_kernel(x_ref, w_ref, shift_ref, *rest, relu, has_res):
    if has_res:
        res_ref, o_ref, acc_ref = rest
    else:
        o_ref, acc_ref = rest
    k = pl.program_id(2)

    @pl.when(k == 0)
    def _():
        acc_ref[...] = jnp.zeros_like(acc_ref)

    acc_ref[...] += jnp.dot(x_ref[...], w_ref[...],
                            preferred_element_type=jnp.float32)

    @pl.when(k == pl.num_programs(2) - 1)
    def _():
        y = acc_ref[...] + shift_ref[...]
        if has_res:
            y = y + res_ref[...].astype(jnp.float32)
        if relu:
            y = jnp.maximum(y, 0.0)
        o_ref[...] = y.astype(o_ref.dtype)


def _pick_tile(dim, target):
    """Largest multiple of 128 that divides `dim` and is <= target; else full dim."""
    t = min((target // 128) * 128, (dim // 128) * 128)
    while t >= 128:
        if dim % t == 0:
            return t
        t -= 128
    return dim


def matmul_bias(x, w, shift, *, relu, residual=None, out_dtype=jnp.bfloat16,
                target_tm=512, target_tn=256, target_tk=512):
    """out = relu_opt(x @ w + shift [+ residual]).

    x: (M, K) any float; fed to the MXU as bf16.  w: (K, N) (cast to bf16).
    shift: (N,) f32.  residual: optional (M, N).  Accumulation is f32 in VMEM.
    Tiles divide M/N/K exactly -> no HBM padding or output slicing.
    """
    M, K = x.shape
    K2, N = w.shape
    assert K == K2
    tm = _pick_tile(M, target_tm)
    tn = _pick_tile(N, target_tn)
    tk = _pick_tile(K, target_tk)

    x = x.astype(jnp.bfloat16)
    w = w.astype(jnp.bfloat16)
    shift2 = shift.reshape(1, N).astype(jnp.float32)

    in_specs = [
        pl.BlockSpec((tm, tk), lambda i, j, k: (i, k)),
        pl.BlockSpec((tk, tn), lambda i, j, k: (k, j)),
        pl.BlockSpec((1, tn), lambda i, j, k: (0, j)),
    ]
    args = [x, w, shift2]
    has_res = residual is not None
    if has_res:
        in_specs.append(pl.BlockSpec((tm, tn), lambda i, j, k: (i, j)))
        args.append(residual.astype(jnp.bfloat16))

    return pl.pallas_call(
        functools.partial(_matmul_kernel, relu=relu, has_res=has_res),
        out_shape=jax.ShapeDtypeStruct((M, N), out_dtype),
        grid_spec=pltpu.PrefetchScalarGridSpec(
            num_scalar_prefetch=0,
            grid=(M // tm, N // tn, K // tk),
            in_specs=in_specs,
            out_specs=pl.BlockSpec((tm, tn), lambda i, j, k: (i, j)),
            scratch_shapes=[pltpu.VMEM((tm, tn), jnp.float32)],
        ),
        compiler_params=pltpu.CompilerParams(
            dimension_semantics=("parallel", "parallel", "arbitrary")),
    )(*args)


# ----------------------------------------------------------------------------
# Conv wrappers (NHWC; 1x1 is a direct matmul, kxk uses NHWC im2col)
# ----------------------------------------------------------------------------
def conv1x1(x, w, shift, *, stride=1, relu, residual=None, out_dtype=jnp.bfloat16):
    """1x1 conv + folded BN (+ optional residual + ReLU).  x: (N, H, W, C) NHWC."""
    if stride > 1:
        x = x[:, ::stride, ::stride, :]
    N, H, W, C = x.shape
    O = w.shape[1]
    res_flat = residual.reshape(N * H * W, O) if residual is not None else None
    y = matmul_bias(x.reshape(N * H * W, C), w, shift, relu=relu,
                    residual=res_flat, out_dtype=out_dtype)
    return y.reshape(N, H, W, O)


def conv_kxk(x, w, shift, *, k, stride, pad, relu, out_dtype=jnp.bfloat16):
    """kxk conv + folded BN (+ optional ReLU) via NHWC im2col + Pallas matmul."""
    N, H, W, C = x.shape
    O = w.shape[1]
    Ho = (H + 2 * pad - k) // stride + 1
    Wo = (W + 2 * pad - k) // stride + 1
    xp = jnp.pad(x, ((0, 0), (pad, pad), (pad, pad), (0, 0)))
    patches = []
    for i in range(k):
        for j in range(k):
            patches.append(xp[:, i:i + stride * (Ho - 1) + 1:stride,
                                 j:j + stride * (Wo - 1) + 1:stride, :])
    col = jnp.concatenate(patches, axis=-1).reshape(N * Ho * Wo, k * k * C)
    y = matmul_bias(col, w, shift, relu=relu, out_dtype=out_dtype)
    return y.reshape(N, Ho, Wo, O)


def maxpool_3x3_s2(x):
    """MaxPool2d(kernel=3, stride=2, padding=1) in NHWC — small one-shot glue."""
    N, H, W, C = x.shape
    k, s, pad = 3, 2, 1
    Ho = (H + 2 * pad - k) // s + 1
    Wo = (W + 2 * pad - k) // s + 1
    xp = jnp.pad(x, ((0, 0), (pad, pad), (pad, pad), (0, 0)),
                 constant_values=-jnp.inf)
    out = jnp.full((N, Ho, Wo, C), -jnp.inf, x.dtype)
    for i in range(k):
        for j in range(k):
            out = jnp.maximum(out, xp[:, i:i + s * (Ho - 1) + 1:s,
                                         j:j + s * (Wo - 1) + 1:s, :])
    return out


# ----------------------------------------------------------------------------
# Deterministic synthetic ResNet-50 parameters (BN scale folded into weights)
# ----------------------------------------------------------------------------
LAYER_CFG = [(64, 3, 1), (128, 4, 2), (256, 6, 2), (512, 3, 2)]  # (planes, blocks, stride)
EXPANSION = 4


class ParamGen:
    def __init__(self, key):
        self.key = key

    def next(self, shape, scale=0.05):
        self.key, sub = jax.random.split(self.key)
        return jax.random.normal(sub, shape, jnp.float32) * scale


def _bn_scale_shift(pg, c):
    gamma = 1.0 + pg.next((c,), 0.1)
    beta = pg.next((c,), 0.1)
    mean = pg.next((c,), 0.1)
    var = 1.0 + jnp.abs(pg.next((c,), 0.1))
    scale = gamma / jnp.sqrt(var + 1e-5)
    shift = beta - mean * scale
    return scale, shift


def _fold_conv(w, scale):
    """(O, C, kh, kw) conv weight -> (kh*kw*C, O) matmul weight with BN scale folded, bf16."""
    O, C, kh, kw = w.shape
    wm = w.transpose(2, 3, 1, 0).reshape(kh * kw * C, O) * scale[None, :]
    return wm.astype(jnp.bfloat16)


def make_params(key):
    pg = ParamGen(key)

    def conv_bn(o, c, k):
        w = pg.next((o, c, k, k), 0.05)
        scale, shift = _bn_scale_shift(pg, o)
        return _fold_conv(w, scale), shift

    params = {}
    params['w1'], params['b1'] = conv_bn(64, 3, 7)
    inplanes = 64
    layers = []
    for planes, blocks, _stride in LAYER_CFG:
        blk_list = []
        for b in range(blocks):
            p = {}
            p['w1'], p['b1'] = conv_bn(planes, inplanes, 1)
            p['w2'], p['b2'] = conv_bn(planes, planes, 3)
            p['w3'], p['b3'] = conv_bn(planes * EXPANSION, planes, 1)
            if b == 0:
                p['wd'], p['bd'] = conv_bn(planes * EXPANSION, inplanes, 1)
            inplanes = planes * EXPANSION
            blk_list.append(p)
        layers.append(blk_list)
    params['layers'] = layers
    # fc = first element of Sequential: Linear(2048, 1000) with bias
    params['fc_w'] = pg.next((1000, 2048), 0.02).T.astype(jnp.bfloat16)   # (2048, 1000)
    params['fc_b'] = pg.next((1000,), 0.02)
    return params


# ----------------------------------------------------------------------------
# Forward pass
# ----------------------------------------------------------------------------
def bottleneck_fwd(x, p, stride):
    out = conv1x1(x, p['w1'], p['b1'], stride=1, relu=True)
    out = conv_kxk(out, p['w2'], p['b2'], k=3, stride=stride, pad=1, relu=True)
    if 'wd' in p:
        identity = conv1x1(x, p['wd'], p['bd'], stride=stride, relu=False)
    else:
        identity = x
    # conv3 + BN + residual add + ReLU, all fused in the matmul epilogue
    return conv1x1(out, p['w3'], p['b3'], stride=1, relu=True, residual=identity)


def feature_extractor_forward(params, x):
    """x: (N, 3, H, W) float32  ->  (N, 1000) float32 (Linear(2048,1000) output)."""
    x = jnp.transpose(x, (0, 2, 3, 1))                       # single NCHW -> NHWC transpose
    out = conv_kxk(x, params['w1'], params['b1'], k=7, stride=2, pad=3, relu=True)
    out = maxpool_3x3_s2(out)
    for blk_list, (_planes, _blocks, layer_stride) in zip(params['layers'], LAYER_CFG):
        for b, blk in enumerate(blk_list):
            out = bottleneck_fwd(out, blk, stride=layer_stride if b == 0 else 1)
    feat = jnp.mean(out.astype(jnp.float32), axis=(1, 2))    # adaptive avgpool -> (N, 2048)
    return matmul_bias(feat, params['fc_w'], params['fc_b'], relu=False,
                       out_dtype=jnp.float32)


# ----------------------------------------------------------------------------
if __name__ == "__main__":
    key = jax.random.PRNGKey(0)
    kp, kx, k1, k2, k3 = jax.random.split(key, 5)

    # Sanity check of the Pallas matmul + bias + residual + ReLU kernel vs pure JAX
    # (reference uses the same bf16 operand cast; accumulation is f32 both ways).
    ta = jax.random.normal(k1, (256, 1024), jnp.float32)
    tb = jax.random.normal(k2, (1024, 256), jnp.float32)
    ts = jnp.linspace(-0.2, 0.2, 256, dtype=jnp.float32)
    tr = jax.random.normal(k3, (256, 256), jnp.float32)
    got = matmul_bias(ta, tb, ts, relu=True, residual=tr, out_dtype=jnp.float32)
    ref = jnp.maximum(
        jnp.dot(ta.astype(jnp.bfloat16), tb.astype(jnp.bfloat16),
                preferred_element_type=jnp.float32)
        + ts + tr.astype(jnp.bfloat16).astype(jnp.float32), 0.0)
    assert jnp.allclose(got, ref, atol=2e-2, rtol=2e-2)

    params = make_params(kp)
    # batch=2, 3-channel, 32x32 image (survives the /32 downsampling of ResNet-50)
    x = jax.random.normal(kx, (2, 3, 32, 32), jnp.float32)

    fwd = jax.jit(feature_extractor_forward)
    y = fwd(params, x)
    y = jax.block_until_ready(y)

    assert y.shape == (2, 1000) and y.dtype == jnp.float32
    assert bool(jnp.all(jnp.isfinite(y)))
    print("KERNEL_OK")
</pallas_src>

<mosaic_0001>
module attributes {stable_mosaic.version = 11 : i64} {
  func.func @_matmul_kernel(%arg0: i32, %arg1: i32, %arg2: i32, %arg3: memref<256x512xbf16, #tpu.memory_space<vmem>>, %arg4: memref<512x256xbf16, #tpu.memory_space<vmem>>, %arg5: memref<1x256xf32, #tpu.memory_space<vmem>>, %arg6: memref<256x256xbf16, #tpu.memory_space<vmem>>, %arg7: memref<256x256xf32, #tpu.memory_space<vmem>>, %arg8: memref<256x256xf32, #tpu.memory_space<vmem>>) attributes {dimension_semantics = [#tpu.dimension_semantics<parallel>, #tpu.dimension_semantics<parallel>, #tpu.dimension_semantics<arbitrary>], iteration_bounds = array<i64: 1, 1, 2>, scalar_prefetch = 0 : i64, scratch_operands = 1 : i64, tpu.core_type = #tpu.core_type<tc>, window_params = [{transform_indices = @transform_0, window_bounds = array<i64: 256, 512>}, {transform_indices = @transform_1, window_bounds = array<i64: 512, 256>}, {transform_indices = @transform_2, window_bounds = array<i64: 1, 256>}, {transform_indices = @transform_3, window_bounds = array<i64: 256, 256>}, {transform_indices = @transform_4, window_bounds = array<i64: 256, 256>}]} {
    %c0_i32 = arith.constant 0 : i32
    %0 = arith.cmpi eq, %arg2, %c0_i32 : i32
    %1 = arith.extui %0 : i1 to i32
    %c0_i32_0 = arith.constant 0 : i32
    %2 = arith.cmpi ne, %1, %c0_i32_0 : i32
    scf.if %2 {
      %cst_9 = arith.constant 0.000000e+00 : f32
      %12 = vector.broadcast %cst_9 : f32 to vector<256x256xf32>
      %c0_10 = arith.constant 0 : index
      %c0_11 = arith.constant 0 : index
      %13 = vector.load %arg8[%c0_10, %c0_11] : memref<256x256xf32, #tpu.memory_space<vmem>>, vector<256x256xf32>
      tpu.vector_store %arg8[%c0_10, %c0_11], %12 {strides = array<i32>} : memref<256x256xf32, #tpu.memory_space<vmem>>, vector<256x256xf32>,
    } else {
    }
    %c0 = arith.constant 0 : index
    %c0_1 = arith.constant 0 : index
    %3 = vector.load %arg8[%c0, %c0_1] : memref<256x256xf32, #tpu.memory_space<vmem>>, vector<256x256xf32>
    %c0_2 = arith.constant 0 : index
    %c0_3 = arith.constant 0 : index
    %4 = vector.load %arg3[%c0_2, %c0_3] : memref<256x512xbf16, #tpu.memory_space<vmem>>, vector<256x512xbf16>
    %c0_4 = arith.constant 0 : index
    %c0_5 = arith.constant 0 : index
    %5 = vector.load %arg4[%c0_4, %c0_5] : memref<512x256xbf16, #tpu.memory_space<vmem>>, vector<512x256xbf16>
    %cst = arith.constant dense<0.000000e+00> : vector<256x256xf32>
    %6 = tpu.matmul %4, %5, %cst {dimension_numbers = #tpu.dot_dimension_numbers<[1], [0], [0], [1], [0, 0, 1, 1], [], []>} : vector<256x512xbf16>, vector<512x256xbf16>, vector<256x256xf32> -> vector<256x256xf32>
    %7 = arith.addf %3, %6 : vector<256x256xf32>
    %c0_6 = arith.constant 0 : index
    %c0_7 = arith.constant 0 : index
    %8 = vector.load %arg8[%c0_6, %c0_7] : memref<256x256xf32, #tpu.memory_space<vmem>>, vector<256x256xf32>
    tpu.vector_store %arg8[%c0_6, %c0_7], %7 {strides = array<i32>} : memref<256x256xf32, #tpu.memory_space<vmem>>, vector<256x256xf32>,
    %c1_i32 = arith.constant 1 : i32
    %9 = arith.cmpi eq, %arg2, %c1_i32 : i32
    %10 = arith.extui %9 : i1 to i32
    %c0_i32_8 = arith.constant 0 : i32
    %11 = arith.cmpi ne, %10, %c0_i32_8 : i32
    scf.if %11 {
      %c0_9 = arith.constant 0 : index
      %c0_10 = arith.constant 0 : index
      %12 = vector.load %arg8[%c0_9, %c0_10] : memref<256x256xf32, #tpu.memory_space<vmem>>, vector<256x256xf32>
      %c0_11 = arith.constant 0 : index
      %c0_12 = arith.constant 0 : index
      %13 = vector.load %arg5[%c0_11, %c0_12] : memref<1x256xf32, #tpu.memory_space<vmem>>, vector<1x256xf32>
      %14 = vector.broadcast %13 : vector<1x256xf32> to vector<256x256xf32>
      %15 = arith.addf %12, %14 : vector<256x256xf32>
      %c0_13 = arith.constant 0 : index
      %c0_14 = arith.constant 0 : index
      %16 = vector.load %arg6[%c0_13, %c0_14] : memref<256x256xbf16, #tpu.memory_space<vmem>>, vector<256x256xbf16>
      %17 = arith.extf %16 : vector<256x256xbf16> to vector<256x256xf32>
      %18 = arith.addf %15, %17 : vector<256x256xf32>
      %cst_15 = arith.constant 0.000000e+00 : f32
      %19 = vector.broadcast %cst_15 : f32 to vector<256x256xf32>
      %20 = arith.maximumf %18, %19 : vector<256x256xf32>
      %c0_16 = arith.constant 0 : index
      %c0_17 = arith.constant 0 : index
      %21 = vector.load %arg7[%c0_16, %c0_17] : memref<256x256xf32, #tpu.memory_space<vmem>>, vector<256x256xf32>
      tpu.vector_store %arg7[%c0_16, %c0_17], %20 {strides = array<i32>} : memref<256x256xf32, #tpu.memory_space<vmem>>, vector<256x256xf32>,
    } else {
    }
    return
  }
  func.func @transform_0(%arg0: i32, %arg1: i32, %arg2: i32) -> (i32, i32) {
    %c0_i32 = arith.constant 0 : i32
    return %arg0, %arg2 : i32, i32
  }
  func.func @transform_1(%arg0: i32, %arg1: i32, %arg2: i32) -> (i32, i32) {
    %c0_i32 = arith.constant 0 : i32
    return %arg2, %arg1 : i32, i32
  }
  func.func @transform_2(%arg0: i32, %arg1: i32, %arg2: i32) -> (i32, i32) {
    %c0_i32 = arith.constant 0 : i32
    %c0_i32_0 = arith.constant 0 : i32
    return %c0_i32, %arg1 : i32, i32
  }
  func.func @transform_3(%arg0: i32, %arg1: i32, %arg2: i32) -> (i32, i32) {
    %c0_i32 = arith.constant 0 : i32
    return %arg0, %arg1 : i32, i32
  }
  func.func @transform_4(%arg0: i32, %arg1: i32, %arg2: i32) -> (i32, i32) {
    %c0_i32 = arith.constant 0 : i32
    return %arg0, %arg1 : i32, i32
  }
}

</mosaic_0001>

<bundles_post_ra>
// kernel: tpu_custom_call.1
= control target key start
LH: loop header
LB: loop body
LE: loop exit
PB: predicated region body
PF: predicated region fallthrough
CT: control target
= control target key end

     0   :  { %s3533_s0 = inlined_call_operand.hbm [shape: bf16[256,1024], index: 0, kind: input, shape index: {}]   ;;  %s3534_s1 = inlined_call_operand.hbm [shape: bf16[1024,256], index: 1, kind: input, shape index: {}]   ;;  %s3535_s2 = inlined_call_operand.vmem [shape: f32[1,256], index: 2, kind: input, shape index: {}]   ;;  %s3536_s3 = inlined_call_operand.hbm [shape: bf16[256,256], index: 3, kind: input, shape index: {}]   ;;  %s3537_s4 = inlined_call_operand.hbm [shape: f32[256,256], index: 4, kind: output, shape index: {}]  }
   0x1   :  { %3544 = sst [smem:[#allocation14_spill]] %s3533_s0 }
   0x2   :  { %9 = vsyncpa [#allocation4], 0 }
   0x3   :  { %11 = vsyncpa [#allocation4 + $0x1], 0 }
   0x4   :  { %12 = vsyncpa [#allocation7], 0 }
   0x5   :  { %14 = vsyncpa [#allocation7 + $0x1], 0 }
   0x6   :  { %15 = vsyncpa [#allocation5], 0  ;;  %s3027_s15 = smov 0   ;;  %s3029_s16 = smov 0  }
   0x7   :  { %s3031_s17 = smov 0   ;;  %s3033_s18 = smov 0  }
   0x8   :  { %s3035_s19 = smov 0   ;;  %s3037_s20 = smov 0  }
   0x9 LB: > { %s3056_s21 = sadd.s32 4294967295, %s2988_s20   ;;  %s49_s22 = sadd.s32 1, %s2976_s17  ;;  %s2988_s20 = sphi %s3037_s20, %s21_s20   ;;  %s2984_s19 = sphi %s3035_s19, %s3561_s19   ;;  %s2980_s18 = sphi %s3033_s18, %s3560_s18   ;;  %s2976_s17 = sphi %s3031_s17, %s3559_s17   ;;  %s2972_s16 = sphi %s3029_s16, %s3558_s16   ;;  %s2968_s15 = sphi %s3027_s15, %s3557_s15  }
   0xa   : > { %p56_p0 = scmp.ne.s32.totalorder %s2976_s17, %s2972_s16  ;;  %p57_p1 = scmp.eq.s32.totalorder %s2988_s20, 0 }
   0xb   : > { %p62_p2 = scmp.ne.s32.totalorder %s2972_s16, %s2968_s15  ;;  %p3538_p3 = scmp.eq.s32.totalorder %s3056_s21, 0 }
   0xc   : > { %p58_p4 = por %p57_p1, %p56_p0  ;;  %p2318_p5 = scmp.ge.s32.totalorder %s2988_s20, 1 }
   0xd   : > { %p3067_p6 = por %p3538_p3, %p62_p2  ;;  %p183_p7 = scmp.lt.s32.totalorder %s2988_s20, 3 }
   0xe   : > { %s2990_s25 = smov [#allocation8]   ;;  %p2558_p10 = scmp.lt.s32.totalorder %s2988_s20, 2 }
   0xf   : > { %s3545_s23 = scalar_select %p3067_p6, 1, 0 }
  0x10   : > { %p3072_p8 = pnand %p2318_p5, %p183_p7  ;;  %s209_s26 = sshll.u32 %s2990_s25, 4  ;;  %s210_s26 = int_to_ptr.vmem [resolvable:$true] %s209_s26 }
  0x11   : > { %p3085_p12 = pnand %p2558_p10, %p58_p4  ;;  %s33_s29 = sadd.s32 1, %s2984_s19 }
  0x12   : > { %s3546_s24 = scalar_select %p3072_p8, 1, 0 }
  0x13   : > { %p2546_p9 = pneg %p3072_p8  ;;  %s2812_s6 = scalar_lea.hbm %s3536_s3, 4096 }
  0x14   : > { %s3548_s28 = scalar_select %p3085_p12, 1, 0 }
  0x15   : > { %p3081_p11 = pnand %p2546_p9, %p3538_p3  ;;  %p2813_p13 = scmp.ne.s32.totalorder %s3536_s3, %s2812_s6 }
  0x16   : > { %p2819_p4 = scmp.lt.u32.totalorder %s2812_s6, %s3536_s3 }
  0x17   : > { %p2814_p0 = pneg %p3081_p11 }
  0x19   : > { %p2815_p1 = pnand %p2814_p0, %p2813_p13 }
  0x1b   : > { %p2816_p2 = pneg %p2815_p1 }
  0x1d   : > { %p2821_p5 = pnand %p2819_p4, %p2816_p2 }
  0x1f   : > { %2824 = shalt.err (!%p2821_p5)
}
  0x20   : > { %s2825_s11 = scalar_lea.vmem %s210_s26, 4096  ;;  %p2833_p3 = scmp.lt.s32.totalorder %s210_s26, %s210_s26 }
  0x21   : > { %p2826_p7 = scmp.ne.s32.totalorder %s210_s26, %s2825_s11  ;;  %p2834_p6 = scmp.lt.s32.totalorder %s2825_s11, %s2825_s11 }
  0x23   : > { %p2828_p9 = pnand %p2826_p7, %p2814_p0  ;;  %p2835_p8 = por %p2834_p6, %p2833_p3 }
  0x25   : > { %p2829_p10 = pneg %p2828_p9 }
  0x27   : > { %p2836_p12 = pnand %p2835_p8, %p2829_p10 }
  0x29   : > { %2839 = shalt.err (!%p2836_p12)
}
  0x2a   : > { %s3542_s12 = smov 128   ;;  %s3543_s13 = smov 8  }
  0x2b   : > { %2549 = dma.hbm_to_vmem [thread:$0]  (!%p3081_p11), %s3536_s3, 4096, %s210_s26, [#allocation7], %s3542_s12, %s3542_s12, %s3543_s13  }
  0x2c   : > { %p34_p3 = scmp.ge.s32.totalorder %s33_s29, 2  ;;  %s223_s25 = sand.u32 1, %s2976_s17  }
  0x2d   : > { %s2467_s30 = sshll.u32 %s2984_s19, 8  ;;  %s3113_s5 = sshll.u32 %s223_s25, 9 }
  0x2e   : > { %s3563_s29 = smov (%p34_p3, %s33_s29), 0  ;;  %s3549_s0 = sld [smem:[#allocation14_spill]] }
  0x2f   : > { %s45_s6 = ssub.s32 %s2984_s19, %s3563_s29  ;;  %s227_s26 = scalar_lea.vmem [#allocation3], %s3113_s5 }
  0x30   : > { %p47_p6 = scmp.eq.s32.totalorder %s45_s6, 0  ;;  %s237_s9 = sshll.u32 %s227_s26, 4  ;;  %s3128_s9 = int_to_ptr.vmem [resolvable:$true] %s237_s9 }
  0x31   : > { %s247_s11 = sand.u32 1, %s2988_s20   ;;  %s3131_s14 = scalar_lea.sflag [#allocation4], %s223_s25 }
  0x32   : > { %s3126_s10 = scalar_select %p47_p6, %s2976_s17, %s49_s22  }
  0x33   : > { %p3550_p11 = scmp.ne.s32.totalorder %s3548_s28, 0 }
  0x34   : > { %s3120_s8 = scalar_lea.hbm %s3549_s0, %s2467_s30  ;;  %s2845_s27 = scalar_lea.hbm %s3549_s0, 16384 }
  0x35   : > { %s2840_s15 = scalar_lea.hbm %s3120_s8, 8192  ;;  %p2842_p12 = pneg %p3550_p11 }
  0x36   : > { %p2841_p8 = scmp.ne.s32.totalorder %s3120_s8, %s2840_s15  ;;  %p2846_p1 = scmp.lt.u32.totalorder %s3120_s8, %s3549_s0 }
  0x37   : > { %p2847_p2 = scmp.lt.u32.totalorder %s2845_s27, %s2840_s15  ;;  %p2849_p5 = scmp.lt.u32.totalorder %s2840_s15, %s3120_s8 }
  0x38   : > { %p2843_p13 = pnand %p2842_p12, %p2841_p8 }
  0x39   : > { %p2848_p4 = por %p2847_p2, %p2846_p1 }
  0x3a   : > { %p2844_p0 = pneg %p2843_p13 }
  0x3b   : > { %p2850_p7 = por %p2849_p5, %p2848_p4 }
  0x3d   : > { %p2851_p9 = pnand %p2850_p7, %p2844_p0 }
  0x3f   : > { %2854 = shalt.err (!%p2851_p9)
}
  0x40   : > { %s2855_s25 = scalar_lea.vmem %s3128_s9, 8192  ;;  %s2993_s26 = smov [#allocation3]  }
  0x41   : > { %p2856_p10 = scmp.ne.s32.totalorder %s3128_s9, %s2855_s25  ;;  %s2860_s30 = sshll.u32 %s2993_s26, 4  ;;  %s2861_s30 = int_to_ptr.vmem [resolvable:$false] %s2860_s30 }
  0x42   : > { %s2862_s6 = scalar_lea.vmem %s2861_s30, 16384  ;;  %p2863_p8 = scmp.lt.s32.totalorder %s3128_s9, %s2861_s30 }
  0x43   : > { %p2858_p3 = pnand %p2856_p10, %p2842_p12  ;;  %p2864_p13 = scmp.lt.s32.totalorder %s2862_s6, %s2855_s25 }
  0x45   : > { %p2859_p6 = pneg %p2858_p3  ;;  %p2865_p1 = por %p2864_p13, %p2863_p8 }
  0x47   : > { %p2866_p2 = pnand %p2865_p1, %p2859_p6 }
  0x49   : > { %2869 = shalt.err (!%p2866_p2)
}
  0x4a   : > { %s2994_s15 = smov 512   ;;  %s2995_s27 = smov 256  }
  0x4b   : > { %s2996_s7 = smov 16   ;;  %s2469_s22 = sshll.u32 %s2984_s19, 13 }
  0x4c   : > { %2553 = dma.hbm_to_vmem [thread:$0]  (!%p3550_p11), %s3120_s8, 8192, %s3128_s9, %s3131_s14, %s2994_s15, %s2995_s27, %s2996_s7  }
  0x4d   : > { %s251_s26 = scalar_lea.vmem [#allocation6], %s3113_s5  ;;  %s3164_s12 = scalar_lea.hbm %s3534_s1, %s2469_s22 }
  0x4e   : > { %s261_s30 = sshll.u32 %s251_s26, 4  ;;  %s3170_s13 = scalar_lea.sflag [#allocation7], %s247_s11  ;;  %s3166_s30 = int_to_ptr.vmem [resolvable:$true] %s261_s30 }
  0x4f   : > { %s2870_s0 = scalar_lea.hbm %s3164_s12, 8192  ;;  %s2875_s9 = scalar_lea.hbm %s3534_s1, 16384 }
  0x50   : > { %p2871_p0 = scmp.ne.s32.totalorder %s3164_s12, %s2870_s0  ;;  %p2876_p7 = scmp.lt.u32.totalorder %s3164_s12, %s3534_s1 }
  0x51   : > { %p2877_p9 = scmp.lt.u32.totalorder %s2875_s9, %s2870_s0  ;;  %p2879_p3 = scmp.lt.u32.totalorder %s2870_s0, %s3164_s12 }
  0x52   : > { %p2873_p4 = pnand %p2871_p0, %p2842_p12 }
  0x53   : > { %p2878_p10 = por %p2877_p9, %p2876_p7 }
  0x54   : > { %p2874_p5 = pneg %p2873_p4 }
  0x55   : > { %p2880_p6 = por %p2879_p3, %p2878_p10 }
  0x57   : > { %p2881_p8 = pnand %p2880_p6, %p2874_p5 }
  0x59   : > { %2884 = shalt.err (!%p2881_p8)
}
  0x5a   : > { %s2885_s11 = scalar_lea.vmem %s3166_s30, 8192  ;;  %s2997_s27 = smov [#allocation6]  }
  0x5b   : > { %p2886_p13 = scmp.ne.s32.totalorder %s3166_s30, %s2885_s11  ;;  %s2890_s7 = sshll.u32 %s2997_s27, 4  ;;  %s2891_s7 = int_to_ptr.vmem [resolvable:$false] %s2890_s7 }
  0x5c   : > { %s2892_s22 = scalar_lea.vmem %s2891_s7, 16384  ;;  %p2893_p0 = scmp.lt.s32.totalorder %s3166_s30, %s2891_s7 }
  0x5d   : > { %p2888_p1 = pnand %p2886_p13, %p2842_p12  ;;  %p2894_p4 = scmp.lt.s32.totalorder %s2892_s22, %s2885_s11 }
  0x5f   : > { %p2889_p2 = pneg %p2888_p1  ;;  %p2895_p7 = por %p2894_p4, %p2893_p0 }
  0x61   : > { %p2896_p9 = pnand %p2895_p7, %p2889_p2 }
  0x63   : > { %2899 = shalt.err (!%p2896_p9)
}
  0x64   : > { %s3551_s0 = smov 8   ;;  %s3552_s26 = smov 128  }
  0x65   : > { %2556 = dma.hbm_to_vmem [thread:$0]  (!%p3550_p11), %s3164_s12, 8192, %s3166_s30, %s3170_s13, %s3552_s26, %s3552_s26, %s3551_s0  }
  0x66   : > { %p3553_p12 = scmp.ne.s32.totalorder %s3546_s24, 0 }
  0x67   : > { %s275_s25 = sand.u32 (!%p3553_p12), 1, %s2972_s16   ;;  %p3554_p5 = scmp.ne.s32.totalorder (!%p3553_p12), %s3545_s23, 0 }
  0x68   : > { %273 = sbr.rel (%p3553_p12) target bundleno = 642 (0x282), region = 36  ;;  %s2330_s6 = sshll.u32 (!%p3553_p12), %s275_s25, 9 }
  0x69   : > { %s276_s5 = scalar_lea.sflag (!%p3553_p12), [#allocation4], %s275_s25  ;;  %s3202_s8 = scalar_lea.vmem (!%p3553_p12), [#allocation3], %s2330_s6 }
  0x6f   : > { %2951 = dma.done.wait (%p3554_p5), %s276_s5, 8192  }
  0x70   : > { %2953 = vsyncadd (%p3554_p5), %s276_s5, 4294959104  ;;  %s284_s28 = sand.u32 1, %s3056_s21   ;;  %s3209_s12 = scalar_lea.vmem [#allocation6], %s2330_s6 }
  0x71   : > { %s285_s9 = scalar_lea.sflag [#allocation7], %s284_s28 }
  0x72   : > { %2955 = dma.done.wait (%p3554_p5), %s285_s9, 8192  }
  0x73   : > { %2957 = vsyncadd (%p3554_p5), %s285_s9, 4294959104  ;;  %p3555_p11 = scmp.eq.s32.totalorder %s3056_s21, 0 }
  0x75   : > { %2959 = dma.done.wait (%p3555_p11), [#allocation7], 4096   ;;  %p3556_p10 = pmov %p3555_p11 }
  0x76   : > { %p2333_p3 = scmp.ne.s32.totalorder %s2980_s18, 0 }
  0x77   : > { %2961 = vsyncadd (%p3556_p10), [#allocation7], 4294963200  ;;  %v2998_v0 = vmov (!%p2333_p3), 0.0  }
  0x78   : > { %337 = sbr.rel (%p2333_p3) target bundleno = 152 (0x98), region = 52  ;;  %338 = vst [vmem:[#allocation2] sm:$0xff] (!%p2333_p3), %v2998_v0  ;;  %339 = vst [vmem:[#allocation2 + $0x8] sm:$0xff] (!%p2333_p3), %v2998_v0 }
  0x79   : > { %340 = vst [vmem:[#allocation2 + $0x10] sm:$0xff] (!%p2333_p3), %v2998_v0  ;;  %341 = vst [vmem:[#allocation2 + $0x18] sm:$0xff] (!%p2333_p3), %v2998_v0 }
  0x7a   : > { %342 = vst [vmem:[#allocation2 + $0x20] sm:$0xff] (!%p2333_p3), %v2998_v0  ;;  %343 = vst [vmem:[#allocation2 + $0x28] sm:$0xff] (!%p2333_p3), %v2998_v0 }
  0x7b   : > { %344 = vst [vmem:[#allocation2 + $0x30] sm:$0xff] (!%p2333_p3), %v2998_v0  ;;  %345 = vst [vmem:[#allocation2 + $0x38] sm:$0xff] (!%p2333_p3), %v2998_v0 }
  0x7c   : > { %346 = vst [vmem:[#allocation2 + $0x40] sm:$0xff] (!%p2333_p3), %v2998_v0  ;;  %347 = vst [vmem:[#allocation2 + $0x48] sm:$0xff] (!%p2333_p3), %v2998_v0 }
  0x7d   : > { %348 = vst [vmem:[#allocation2 + $0x50] sm:$0xff] (!%p2333_p3), %v2998_v0  ;;  %349 = vst [vmem:[#allocation2 + $0x58] sm:$0xff] (!%p2333_p3), %v2998_v0 }
  0x7e   : > { %350 = vst [vmem:[#allocation2 + $0x60] sm:$0xff] (!%p2333_p3), %v2998_v0  ;;  %351 = vst [vmem:[#allocation2 + $0x68] sm:$0xff] (!%p2333_p3), %v2998_v0 }
  0x7f   : > { %352 = vst [vmem:[#allocation2 + $0x70] sm:$0xff] %v2998_v0  ;;  %353 = vst [vmem:[#allocation2 + $0x78] sm:$0xff] %v2998_v0 }
  0x80   : > { %354 = vst [vmem:[#allocation2 + $0x80] sm:$0xff] %v2998_v0  ;;  %355 = vst [vmem:[#allocation2 + $0x88] sm:$0xff] %v2998_v0 }
  0x81   : > { %356 = vst [vmem:[#allocation2 + $0x90] sm:$0xff] %v2998_v0  ;;  %357 = vst [vmem:[#allocation2 + $0x98] sm:$0xff] %v2998_v0 }
  0x82   : > { %358 = vst [vmem:[#allocation2 + $0xa0] sm:$0xff] %v2998_v0  ;;  %359 = vst [vmem:[#allocation2 + $0xa8] sm:$0xff] %v2998_v0 }
  0x83   : > { %360 = vst [vmem:[#allocation2 + $0xb0] sm:$0xff] %v2998_v0  ;;  %361 = vst [vmem:[#allocation2 + $0xb8] sm:$0xff] %v2998_v0 }
  0x84   : > { %362 = vst [vmem:[#allocation2 + $0xc0] sm:$0xff] %v2998_v0  ;;  %363 = vst [vmem:[#allocation2 + $0xc8] sm:$0xff] %v2998_v0 }
  0x85   : > { %364 = vst [vmem:[#allocation2 + $0xd0] sm:$0xff] %v2998_v0  ;;  %365 = vst [vmem:[#allocation2 + $0xd8] sm:$0xff] %v2998_v0 }
  0x86   : > { %366 = vst [vmem:[#allocation2 + $0xe0] sm:$0xff] %v2998_v0  ;;  %367 = vst [vmem:[#allocation2 + $0xe8] sm:$0xff] %v2998_v0 }
  0x87   : > { %368 = vst [vmem:[#allocation2 + $0xf0] sm:$0xff] %v2998_v0  ;;  %369 = vst [vmem:[#allocation2 + $0xf8] sm:$0xff] %v2998_v0 }
  0x88   : > { %370 = vst [vmem:[#allocation2 + $0x100] sm:$0xff] %v2998_v0  ;;  %371 = vst [vmem:[#allocation2 + $0x108] sm:$0xff] %v2998_v0 }
  0x89   : > { %372 = vst [vmem:[#allocation2 + $0x110] sm:$0xff] %v2998_v0  ;;  %373 = vst [vmem:[#allocation2 + $0x118] sm:$0xff] %v2998_v0 }
  0x8a   : > { %374 = vst [vmem:[#allocation2 + $0x120] sm:$0xff] %v2998_v0  ;;  %375 = vst [vmem:[#allocation2 + $0x128] sm:$0xff] %v2998_v0 }
  0x8b   : > { %376 = vst [vmem:[#allocation2 + $0x130] sm:$0xff] %v2998_v0  ;;  %377 = vst [vmem:[#allocation2 + $0x138] sm:$0xff] %v2998_v0 }
  0x8c   : > { %378 = vst [vmem:[#allocation2 + $0x140] sm:$0xff] %v2998_v0  ;;  %379 = vst [vmem:[#allocation2 + $0x148] sm:$0xff] %v2998_v0 }
  0x8d   : > { %380 = vst [vmem:[#allocation2 + $0x150] sm:$0xff] %v2998_v0  ;;  %381 = vst [vmem:[#allocation2 + $0x158] sm:$0xff] %v2998_v0 }
  0x8e   : > { %382 = vst [vmem:[#allocation2 + $0x160] sm:$0xff] %v2998_v0  ;;  %383 = vst [vmem:[#allocation2 + $0x168] sm:$0xff] %v2998_v0 }
  0x8f   : > { %384 = vst [vmem:[#allocation2 + $0x170] sm:$0xff] %v2998_v0  ;;  %385 = vst [vmem:[#allocation2 + $0x178] sm:$0xff] %v2998_v0 }
  0x90   : > { %386 = vst [vmem:[#allocation2 + $0x180] sm:$0xff] %v2998_v0  ;;  %387 = vst [vmem:[#allocation2 + $0x188] sm:$0xff] %v2998_v0 }
  0x91   : > { %388 = vst [vmem:[#allocation2 + $0x190] sm:$0xff] %v2998_v0  ;;  %389 = vst [vmem:[#allocation2 + $0x198] sm:$0xff] %v2998_v0 }
  0x92   : > { %390 = vst [vmem:[#allocation2 + $0x1a0] sm:$0xff] %v2998_v0  ;;  %391 = vst [vmem:[#allocation2 + $0x1a8] sm:$0xff] %v2998_v0 }
  0x93   : > { %392 = vst [vmem:[#allocation2 + $0x1b0] sm:$0xff] %v2998_v0  ;;  %393 = vst [vmem:[#allocation2 + $0x1b8] sm:$0xff] %v2998_v0 }
  0x94   : > { %394 = vst [vmem:[#allocation2 + $0x1c0] sm:$0xff] %v2998_v0  ;;  %395 = vst [vmem:[#allocation2 + $0x1c8] sm:$0xff] %v2998_v0 }
  0x95   : > { %396 = vst [vmem:[#allocation2 + $0x1d0] sm:$0xff] %v2998_v0  ;;  %397 = vst [vmem:[#allocation2 + $0x1d8] sm:$0xff] %v2998_v0 }
  0x96   : > { %398 = vst [vmem:[#allocation2 + $0x1e0] sm:$0xff] %v2998_v0  ;;  %399 = vst [vmem:[#allocation2 + $0x1e8] sm:$0xff] %v2998_v0 }
  0x97   : > { %400 = vst [vmem:[#allocation2 + $0x1f0] sm:$0xff] %v2998_v0  ;;  %401 = vst [vmem:[#allocation2 + $0x1f8] sm:$0xff] %v2998_v0 }
  0x98 PF: > { %v2620_v1 = vld [vmem:[%s3209_s12 + $0x4] ss:$8 sps:$4 sm:$0xff]   ;;  %v2624_v3 = vld [vmem:[%s3209_s12] ss:$8 sps:$4 sm:$0xff]   ;;  %v2626_v5 = vld [vmem:[%s3209_s12 + $0x14] ss:$8 sps:$4 sm:$0xff]  }
  0x99   : > { %v2622_v2 = vld [vmem:[%s3209_s12 + $0x104] ss:$8 sps:$4 sm:$0xff]   ;;  %1234 = vmatprep.subr.bf16.mxu1 %v2620_v1  ;;  %v2625_v4 = vld [vmem:[%s3209_s12 + $0x100] ss:$8 sps:$4 sm:$0xff]   ;;  %v2628_v6 = vld [vmem:[%s3209_s12 + $0x114] ss:$8 sps:$4 sm:$0xff]  }
  0x9a   : > { %1427 = vmatprep.subr.bf16.mxu0 %v2622_v2  ;;  %1235 = vmatpush1.bf16.msra.mxu1 %v2624_v3  ;;  %v2630_v7 = vld [vmem:[%s3209_s12 + $0x10] ss:$8 sps:$4 sm:$0xff]   ;;  %v2632_v9 = vld [vmem:[%s3209_s12 + $0x24] ss:$8 sps:$4 sm:$0xff]   ;;  %v2636_v11 = vld [vmem:[%s3209_s12 + $0x20] ss:$8 sps:$4 sm:$0xff]  }
  0x9b   : > { %1428 = vmatpush1.bf16.msra.mxu0 %v2625_v4  ;;  %1236 = vmatprep.subr.bf16.mxu1 %v2626_v5  ;;  %v2631_v8 = vld [vmem:[%s3209_s12 + $0x110] ss:$8 sps:$4 sm:$0xff]   ;;  %v2634_v10 = vld [vmem:[%s3209_s12 + $0x124] ss:$8 sps:$4 sm:$0xff]   ;;  %v2637_v12 = vld [vmem:[%s3209_s12 + $0x120] ss:$8 sps:$4 sm:$0xff]  }
  0x9c   : > { %1429 = vmatprep.subr.bf16.mxu0 %v2628_v6  ;;  %v2638_v13 = vld [vmem:[%s3209_s12 + $0x34] ss:$8 sps:$4 sm:$0xff]   ;;  %v2642_v15 = vld [vmem:[%s3209_s12 + $0x30] ss:$8 sps:$4 sm:$0xff]   ;;  %v2644_v17 = vld [vmem:[%s3209_s12 + $0x44] ss:$8 sps:$4 sm:$0xff]  }
  0x9d   : > { %v2640_v14 = vld [vmem:[%s3209_s12 + $0x134] ss:$8 sps:$4 sm:$0xff]   ;;  %v2643_v16 = vld [vmem:[%s3209_s12 + $0x130] ss:$8 sps:$4 sm:$0xff]   ;;  %v2646_v18 = vld [vmem:[%s3209_s12 + $0x144] ss:$8 sps:$4 sm:$0xff]  }
  0x9e   : > { %1237 = vmatpush1.bf16.msra.mxu1 %v2630_v7  ;;  %v2648_v19 = vld [vmem:[%s3209_s12 + $0x40] ss:$8 sps:$4 sm:$0xff]   ;;  %v2650_v21 = vld [vmem:[%s3209_s12 + $0x54] ss:$8 sps:$4 sm:$0xff]   ;;  %v2654_v23 = vld [vmem:[%s3209_s12 + $0x50] ss:$8 sps:$4 sm:$0xff]  }
  0x9f   : > { %1430 = vmatpush1.bf16.msra.mxu0 %v2631_v8  ;;  %1238 = vmatprep.subr.bf16.mxu1 %v2632_v9  ;;  %v2649_v20 = vld [vmem:[%s3209_s12 + $0x140] ss:$8 sps:$4 sm:$0xff]   ;;  %v2652_v22 = vld [vmem:[%s3209_s12 + $0x154] ss:$8 sps:$4 sm:$0xff]   ;;  %v2655_v24 = vld [vmem:[%s3209_s12 + $0x150] ss:$8 sps:$4 sm:$0xff]  }
  0xa0   : > { %1431 = vmatprep.subr.bf16.mxu0 %v2634_v10  ;;  %v2656_v25 = vld [vmem:[%s3209_s12 + $0x64] ss:$8 sps:$4 sm:$0xff]   ;;  %v2660_v27 = vld [vmem:[%s3209_s12 + $0x60] ss:$8 sps:$4 sm:$0xff]   ;;  %v2662_v29 = vld [vmem:[%s3209_s12 + $0x74] ss:$8 sps:$4 sm:$0xff]  }
  0xa1   : > { %v2658_v26 = vld [vmem:[%s3209_s12 + $0x164] ss:$8 sps:$4 sm:$0xff]   ;;  %v2661_v28 = vld [vmem:[%s3209_s12 + $0x160] ss:$8 sps:$4 sm:$0xff]   ;;  %v2664_v30 = vld [vmem:[%s3209_s12 + $0x174] ss:$8 sps:$4 sm:$0xff]  }
  0xa2   : > { %1239 = vmatpush1.bf16.msra.mxu1 %v2636_v11  ;;  %v2666_v31 = vld [vmem:[%s3209_s12 + $0x70] ss:$8 sps:$4 sm:$0xff]   ;;  %v2668_v33 = vld [vmem:[%s3209_s12 + $0x84] ss:$8 sps:$4 sm:$0xff]   ;;  %v2672_v35 = vld [vmem:[%s3209_s12 + $0x80] ss:$8 sps:$4 sm:$0xff]  }
  0xa3   : > { %1432 = vmatpush1.bf16.msra.mxu0 %v2637_v12  ;;  %1240 = vmatprep.subr.bf16.mxu1 %v2638_v13  ;;  %v2667_v32 = vld [vmem:[%s3209_s12 + $0x170] ss:$8 sps:$4 sm:$0xff]   ;;  %v2670_v34 = vld [vmem:[%s3209_s12 + $0x184] ss:$8 sps:$4 sm:$0xff]   ;;  %v2673_v36 = vld [vmem:[%s3209_s12 + $0x180] ss:$8 sps:$4 sm:$0xff]  }
  0xa4   : > { %1433 = vmatprep.subr.bf16.mxu0 %v2640_v14  ;;  %v2674_v37 = vld [vmem:[%s3209_s12 + $0x94] ss:$8 sps:$4 sm:$0xff]   ;;  %v2678_v39 = vld [vmem:[%s3209_s12 + $0x90] ss:$8 sps:$4 sm:$0xff]   ;;  %v2680_v41 = vld [vmem:[%s3209_s12 + $0xa4] ss:$8 sps:$4 sm:$0xff]  }
  0xa5   : > { %v2676_v38 = vld [vmem:[%s3209_s12 + $0x194] ss:$8 sps:$4 sm:$0xff]   ;;  %v2679_v40 = vld [vmem:[%s3209_s12 + $0x190] ss:$8 sps:$4 sm:$0xff]   ;;  %v2682_v42 = vld [vmem:[%s3209_s12 + $0x1a4] ss:$8 sps:$4 sm:$0xff]  }
  0xa6   : > { %1241 = vmatpush1.bf16.msra.mxu1 %v2642_v15  ;;  %v2684_v43 = vld [vmem:[%s3209_s12 + $0xa0] ss:$8 sps:$4 sm:$0xff]   ;;  %v2686_v45 = vld [vmem:[%s3209_s12 + $0xb4] ss:$8 sps:$4 sm:$0xff]   ;;  %v2690_v47 = vld [vmem:[%s3209_s12 + $0xb0] ss:$8 sps:$4 sm:$0xff]  }
  0xa7   : > { %1434 = vmatpush1.bf16.msra.mxu0 %v2643_v16  ;;  %1242 = vmatprep.subr.bf16.mxu1 %v2644_v17  ;;  %v2685_v44 = vld [vmem:[%s3209_s12 + $0x1a0] ss:$8 sps:$4 sm:$0xff]   ;;  %v2688_v46 = vld [vmem:[%s3209_s12 + $0x1b4] ss:$8 sps:$4 sm:$0xff]   ;;  %v2691_v48 = vld [vmem:[%s3209_s12 + $0x1b0] ss:$8 sps:$4 sm:$0xff]  }
  0xa8   : > { %1435 = vmatprep.subr.bf16.mxu0 %v2646_v18  ;;  %v2692_v49 = vld [vmem:[%s3209_s12 + $0xc4] ss:$8 sps:$4 sm:$0xff]   ;;  %v2696_v53 = vld [vmem:[%s3209_s12 + $0xc0] ss:$8 sps:$4 sm:$0xff]   ;;  %v2698_v55 = vld [vmem:[%s3209_s12 + $0xd4] ss:$8 sps:$4 sm:$0xff]  }
  0xa9   : > { %v2718_v50 = vld [vmem:[%s3202_s8 + $0x4] ss:$16 sps:$4 sm:$0xff]   ;;  %v2721_v52 = vld [vmem:[%s3202_s8 + $0xc] ss:$16 sps:$4 sm:$0xff]   ;;  %v2697_v54 = vld [vmem:[%s3209_s12 + $0x1c0] ss:$8 sps:$4 sm:$0xff]  }
  0xaa   : > { %1243 = vmatpush1.bf16.msra.mxu1 %v2648_v19  ;;  %v2694_v51 = vld [vmem:[%s3209_s12 + $0x1c4] ss:$8 sps:$4 sm:$0xff]   ;;  %1266 = vmatprep.mubr.bf16.mxu1 %v2718_v50  ;;  %v2700_v56 = vld [vmem:[%s3209_s12 + $0x1d4] ss:$8 sps:$4 sm:$0xff]   ;;  %v2702_v57 = vld [vmem:[%s3209_s12 + $0xd0] ss:$8 sps:$4 sm:$0xff]  }
  0xab   : > { %1436 = vmatpush1.bf16.msra.mxu0 %v2649_v20  ;;  %1244 = vmatprep.subr.bf16.mxu1 %v2650_v21  ;;  %v2703_v58 = vld [vmem:[%s3209_s12 + $0x1d0] ss:$8 sps:$4 sm:$0xff]   ;;  %v2704_v59 = vld [vmem:[%s3209_s12 + $0xe4] ss:$8 sps:$4 sm:$0xff]   ;;  %v2708_v61 = vld [vmem:[%s3209_s12 + $0xe0] ss:$8 sps:$4 sm:$0xff]  }
  0xac   : > { %1437 = vmatprep.subr.bf16.mxu0 %v2652_v22  ;;  %1459 = vmatprep.mubr.bf16.mxu0 %v2721_v52  ;;  %v2706_v60 = vld [vmem:[%s3209_s12 + $0x1e4] ss:$8 sps:$4 sm:$0xff]   ;;  %v2709_v62 = vld [vmem:[%s3209_s12 + $0x1e0] ss:$8 sps:$4 sm:$0xff]   ;;  %v2710_v63 = vld [vmem:[%s3209_s12 + $0xf4] ss:$8 sps:$4 sm:$0xff]  }
  0xad   : > { %v2712_v0 = vld [vmem:[%s3209_s12 + $0x1f4] ss:$8 sps:$4 sm:$0xff]   ;;  %v2714_v1 = vld [vmem:[%s3209_s12 + $0xf0] ss:$8 sps:$4 sm:$0xff]   ;;  %p2462_p6 = scmp.ne.s32.totalorder %s2980_s18, 1 }
  0xae   : > { %1245 = vmatpush1.bf16.msra.mxu1 %v2654_v23  ;;  %v2715_v2 = vld [vmem:[%s3209_s12 + $0x1f0] ss:$8 sps:$4 sm:$0xff]   ;;  %v2722_v5 = vld [vmem:[%s3202_s8 + $0x24] ss:$16 sps:$4 sm:$0xff]   ;;  %v2724_v6 = vld [vmem:[%s3202_s8 + $0x2c] ss:$16 sps:$4 sm:$0xff]  }
  0xaf   : > { %1438 = vmatpush1.bf16.msra.mxu0 %v2655_v24  ;;  %1246 = vmatprep.subr.bf16.mxu1 %v2656_v25  ;;  %v2716_v3 = vld [vmem:[%s3202_s8] ss:$16 sps:$4 sm:$0xff]   ;;  %v2719_v4 = vld [vmem:[%s3202_s8 + $0x8] ss:$16 sps:$4 sm:$0xff]   ;;  %v2728_v9 = vld [vmem:[%s3202_s8 + $0x44] ss:$16 sps:$4 sm:$0xff]  }
  0xb0   : > { %1439 = vmatprep.subr.bf16.mxu0 %v2658_v26  ;;  %v2726_v7 = vld [vmem:[%s3202_s8 + $0x20] ss:$16 sps:$4 sm:$0xff]   ;;  %v2727_v8 = vld [vmem:[%s3202_s8 + $0x28] ss:$16 sps:$4 sm:$0xff]   ;;  %v2730_v10 = vld [vmem:[%s3202_s8 + $0x4c] ss:$16 sps:$4 sm:$0xff]  }
  0xb1   : > { %v2732_v11 = vld [vmem:[%s3202_s8 + $0x40] ss:$16 sps:$4 sm:$0xff]   ;;  %v2733_v12 = vld [vmem:[%s3202_s8 + $0x48] ss:$16 sps:$4 sm:$0xff]   ;;  %v2734_v13 = vld [vmem:[%s3202_s8 + $0x64] ss:$16 sps:$4 sm:$0xff]  }
  0xb2   : > { %1247 = vmatpush1.bf16.msra.mxu1 %v2660_v27  ;;  %v2736_v14 = vld [vmem:[%s3202_s8 + $0x6c] ss:$16 sps:$4 sm:$0xff]   ;;  %v2738_v15 = vld [vmem:[%s3202_s8 + $0x60] ss:$16 sps:$4 sm:$0xff]   ;;  %v2739_v16 = vld [vmem:[%s3202_s8 + $0x68] ss:$16 sps:$4 sm:$0xff]  }
  0xb3   : > { %1440 = vmatpush1.bf16.msra.mxu0 %v2661_v28  ;;  %1248 = vmatprep.subr.bf16.mxu1 %v2662_v29  ;;  %v2740_v17 = vld [vmem:[%s3202_s8 + $0x84] ss:$16 sps:$4 sm:$0xff]   ;;  %v2742_v18 = vld [vmem:[%s3202_s8 + $0x8c] ss:$16 sps:$4 sm:$0xff]   ;;  %v2744_v19 = vld [vmem:[%s3202_s8 + $0x80] ss:$16 sps:$4 sm:$0xff]  }
  0xb4   : > { %1441 = vmatprep.subr.bf16.mxu0 %v2664_v30  ;;  %v2745_v20 = vld [vmem:[%s3202_s8 + $0x88] ss:$16 sps:$4 sm:$0xff]   ;;  %v2746_v21 = vld [vmem:[%s3202_s8 + $0xa4] ss:$16 sps:$4 sm:$0xff]   ;;  %v2748_v22 = vld [vmem:[%s3202_s8 + $0xac] ss:$16 sps:$4 sm:$0xff]  }
  0xb5   : > { %v2750_v23 = vld [vmem:[%s3202_s8 + $0xa0] ss:$16 sps:$4 sm:$0xff]   ;;  %v2751_v24 = vld [vmem:[%s3202_s8 + $0xa8] ss:$16 sps:$4 sm:$0xff]   ;;  %v2752_v25 = vld [vmem:[%s3202_s8 + $0xc4] ss:$16 sps:$4 sm:$0xff]  }
  0xb6   : > { %1249 = vmatpush1.bf16.msra.mxu1 %v2666_v31  ;;  %v2754_v26 = vld [vmem:[%s3202_s8 + $0xcc] ss:$16 sps:$4 sm:$0xff]   ;;  %v2756_v27 = vld [vmem:[%s3202_s8 + $0xc0] ss:$16 sps:$4 sm:$0xff]   ;;  %v2757_v28 = vld [vmem:[%s3202_s8 + $0xc8] ss:$16 sps:$4 sm:$0xff]  }
  0xb7   : > { %1442 = vmatpush1.bf16.msra.mxu0 %v2667_v32  ;;  %1250 = vmatprep.subr.bf16.mxu1 %v2668_v33  ;;  %v2758_v29 = vld [vmem:[%s3202_s8 + $0xe4] ss:$16 sps:$4 sm:$0xff]   ;;  %v2760_v30 = vld [vmem:[%s3202_s8 + $0xec] ss:$16 sps:$4 sm:$0xff]   ;;  %v2762_v31 = vld [vmem:[%s3202_s8 + $0xe0] ss:$16 sps:$4 sm:$0xff]  }
  0xb8   : > { %1443 = vmatprep.subr.bf16.mxu0 %v2670_v34  ;;  %v2763_v32 = vld [vmem:[%s3202_s8 + $0xe8] ss:$16 sps:$4 sm:$0xff]   ;;  %v2764_v33 = vld [vmem:[%s3202_s8 + $0x104] ss:$16 sps:$4 sm:$0xff]   ;;  %v2766_v34 = vld [vmem:[%s3202_s8 + $0x10c] ss:$16 sps:$4 sm:$0xff]  }
  0xb9   : > { %v2790_v50 = vld [vmem:[%s3202_s8 + $0x18c] ss:$16 sps:$4 sm:$0xff]   ;;  %v2793_v52 = vld [vmem:[%s3202_s8 + $0x188] ss:$16 sps:$4 sm:$0xff]  }
  0xba   : > { %1251 = vmatpush1.bf16.msra.mxu1 %v2672_v35  ;;  %v2768_v35 = vld [vmem:[%s3202_s8 + $0x100] ss:$16 sps:$4 sm:$0xff]  }
  0xbb   : > { %1444 = vmatpush1.bf16.msra.mxu0 %v2673_v36  ;;  %1252 = vmatprep.subr.bf16.mxu1 %v2674_v37  ;;  %v2769_v36 = vld [vmem:[%s3202_s8 + $0x108] ss:$16 sps:$4 sm:$0xff]   ;;  %v2770_v37 = vld [vmem:[%s3202_s8 + $0x124] ss:$16 sps:$4 sm:$0xff]  }
  0xbc   : > { %1445 = vmatprep.subr.bf16.mxu0 %v2676_v38  ;;  %v2772_v38 = vld [vmem:[%s3202_s8 + $0x12c] ss:$16 sps:$4 sm:$0xff]  }
  0xbe   : > { %1253 = vmatpush1.bf16.msra.mxu1 %v2678_v39  ;;  %v2774_v39 = vld [vmem:[%s3202_s8 + $0x120] ss:$16 sps:$4 sm:$0xff]  }
  0xbf   : > { %1446 = vmatpush1.bf16.msra.mxu0 %v2679_v40  ;;  %1254 = vmatprep.subr.bf16.mxu1 %v2680_v41  ;;  %v2775_v40 = vld [vmem:[%s3202_s8 + $0x128] ss:$16 sps:$4 sm:$0xff]   ;;  %v2776_v41 = vld [vmem:[%s3202_s8 + $0x144] ss:$16 sps:$4 sm:$0xff]  }
  0xc0   : > { %1447 = vmatprep.subr.bf16.mxu0 %v2682_v42  ;;  %v2778_v42 = vld [vmem:[%s3202_s8 + $0x14c] ss:$16 sps:$4 sm:$0xff]  }
  0xc2   : > { %1255 = vmatpush1.bf16.msra.mxu1 %v2684_v43  ;;  %v2780_v43 = vld [vmem:[%s3202_s8 + $0x140] ss:$16 sps:$4 sm:$0xff]  }
  0xc3   : > { %1448 = vmatpush1.bf16.msra.mxu0 %v2685_v44  ;;  %1256 = vmatprep.subr.bf16.mxu1 %v2686_v45  ;;  %v2781_v44 = vld [vmem:[%s3202_s8 + $0x148] ss:$16 sps:$4 sm:$0xff]   ;;  %v2782_v45 = vld [vmem:[%s3202_s8 + $0x164] ss:$16 sps:$4 sm:$0xff]  }
  0xc4   : > { %1449 = vmatprep.subr.bf16.mxu0 %v2688_v46  ;;  %v2784_v46 = vld [vmem:[%s3202_s8 + $0x16c] ss:$16 sps:$4 sm:$0xff]  }
  0xc6   : > { %1257 = vmatpush1.bf16.msra.mxu1 %v2690_v47  ;;  %v2786_v47 = vld [vmem:[%s3202_s8 + $0x160] ss:$16 sps:$4 sm:$0xff]  }
  0xc7   : > { %1450 = vmatpush1.bf16.msra.mxu0 %v2691_v48  ;;  %1258 = vmatprep.subr.bf16.mxu1 %v2692_v49  ;;  %v2787_v48 = vld [vmem:[%s3202_s8 + $0x168] ss:$16 sps:$4 sm:$0xff]   ;;  %v2788_v49 = vld [vmem:[%s3202_s8 + $0x184] ss:$16 sps:$4 sm:$0xff]  }
  0xc8   : > { %1451 = vmatprep.subr.bf16.mxu0 %v2694_v51  ;;  %v2792_v51 = vld [vmem:[%s3202_s8 + $0x180] ss:$16 sps:$4 sm:$0xff]  }
  0xca   : > { %1259 = vmatpush1.bf16.msra.mxu1 %v2696_v53  ;;  %v2794_v53 = vld [vmem:[%s3202_s8 + $0x1a4] ss:$16 sps:$4 sm:$0xff]  }
  0xcb   : > { %1452 = vmatpush1.bf16.msra.mxu0 %v2697_v54  ;;  %1260 = vmatprep.subr.bf16.mxu1 %v2698_v55  ;;  %v2796_v54 = vld [vmem:[%s3202_s8 + $0x1ac] ss:$16 sps:$4 sm:$0xff]   ;;  %v2798_v55 = vld [vmem:[%s3202_s8 + $0x1a0] ss:$16 sps:$4 sm:$0xff]  }
  0xcc   : > { %1453 = vmatprep.subr.bf16.mxu0 %v2700_v56  ;;  %v2799_v56 = vld [vmem:[%s3202_s8 + $0x1a8] ss:$16 sps:$4 sm:$0xff]  }
  0xce   : > { %1261 = vmatpush1.bf16.msra.mxu1 %v2702_v57  ;;  %v2800_v57 = vld [vmem:[%s3202_s8 + $0x1c4] ss:$16 sps:$4 sm:$0xff]  }
  0xcf   : > { %1454 = vmatpush1.bf16.msra.mxu0 %v2703_v58  ;;  %1262 = vmatprep.subr.bf16.mxu1 %v2704_v59  ;;  %v2802_v58 = vld [vmem:[%s3202_s8 + $0x1cc] ss:$16 sps:$4 sm:$0xff]   ;;  %v2804_v59 = vld [vmem:[%s3202_s8 + $0x1c0] ss:$16 sps:$4 sm:$0xff]  }
  0xd0   : > { %1455 = vmatprep.subr.bf16.mxu0 %v2706_v60  ;;  %v2805_v60 = vld [vmem:[%s3202_s8 + $0x1c8] ss:$16 sps:$4 sm:$0xff]  }
  0xd2   : > { %1263 = vmatpush1.bf16.msra.mxu1 %v2708_v61  ;;  %v2806_v61 = vld [vmem:[%s3202_s8 + $0x1e4] ss:$16 sps:$4 sm:$0xff]  }
  0xd3   : > { %1456 = vmatpush1.bf16.msra.mxu0 %v2709_v62  ;;  %1264 = vmatprep.subr.bf16.mxu1 %v2710_v63  ;;  %v2808_v62 = vld [vmem:[%s3202_s8 + $0x1ec] ss:$16 sps:$4 sm:$0xff]   ;;  %v2810_v63 = vld [vmem:[%s3202_s8 + $0x1e0] ss:$16 sps:$4 sm:$0xff]  }
  0xd4   : > { %1457 = vmatprep.subr.bf16.mxu0 %v2712_v0  ;;  %v2811_v0 = vld [vmem:[%s3202_s8 + $0x1e8] ss:$16 sps:$4 sm:$0xff]  }
  0xd6   : > { %1265 = vmatpush1.bf16.msra.mxu1 %v2714_v1 }
  0xd7   : > { %1458 = vmatpush1.bf16.msra.mxu0 %v2715_v2  ;;  %v402_v2 = vld [vmem:[#allocation2] sm:$0xff] }
  0xd9   : > { %1267 = vmatmul.mubr.bf16.vlgmr.msra.gmra.mrb[0].mxu1 %v2716_v3 }
  0xda   : > { %1460 = vmatmul.mubr.bf16.vlgmr.msra.gmra.mrb[0].mxu0 %v2719_v4  ;;  %1276 = vmatprep.mubr.bf16.mxu1 %v2722_v5 }
  0xdb   : > { %1469 = vmatprep.mubr.bf16.mxu0 %v2724_v6  ;;  %v403_v6 = vld [vmem:[#allocation2 + $0x8] sm:$0xff] }
  0xe1   : > { %1277 = vmatmul.mubr.bf16.gmra.mrb[4].mxu1 %v2726_v7 }
  0xe2   : > { %1470 = vmatmul.mubr.bf16.gmra.mrb[4].mxu0 %v2727_v8  ;;  %1286 = vmatprep.mubr.bf16.mxu1 %v2728_v9 }
  0xe3   : > { %1479 = vmatprep.mubr.bf16.mxu0 %v2730_v10  ;;  %v404_v10 = vld [vmem:[#allocation2 + $0x10] sm:$0xff] }
  0xe9   : > { %1287 = vmatmul.mubr.bf16.gmra.mrb[8].mxu1 %v2732_v11 }
  0xea   : > { %1480 = vmatmul.mubr.bf16.gmra.mrb[8].mxu0 %v2733_v12  ;;  %1296 = vmatprep.mubr.bf16.mxu1 %v2734_v13 }
  0xeb   : > { %1489 = vmatprep.mubr.bf16.mxu0 %v2736_v14 }
  0xf1   : > { %1297 = vmatmul.mubr.bf16.gmra.mrb[12].mxu1 %v2738_v15  ;;  %v405_v15 = vld [vmem:[#allocation2 + $0x18] sm:$0xff] }
  0xf2   : > { %1490 = vmatmul.mubr.bf16.gmra.mrb[12].mxu0 %v2739_v16  ;;  %1306 = vmatprep.mubr.bf16.mxu1 %v2740_v17 }
  0xf3   : > { %1499 = vmatprep.mubr.bf16.mxu0 %v2742_v18 }
  0xf9   : > { %1307 = vmatmul.mubr.bf16.gmra.mrb[16].mxu1 %v2744_v19 }
  0xfa   : > { %1500 = vmatmul.mubr.bf16.gmra.mrb[16].mxu0 %v2745_v20  ;;  %1316 = vmatprep.mubr.bf16.mxu1 %v2746_v21 }
  0xfb   : > { %1509 = vmatprep.mubr.bf16.mxu0 %v2748_v22  ;;  %v406_v22 = vld [vmem:[#allocation2 + $0x20] sm:$0xff] }
 0x101   : > { %1317 = vmatmul.mubr.bf16.gmra.mrb[20].mxu1 %v2750_v23 }
 0x102   : > { %1510 = vmatmul.mubr.bf16.gmra.mrb[20].mxu0 %v2751_v24  ;;  %1326 = vmatprep.mubr.bf16.mxu1 %v2752_v25 }
 0x103   : > { %1519 = vmatprep.mubr.bf16.mxu0 %v2754_v26  ;;  %v407_v26 = vld [vmem:[#allocation2 + $0x28] sm:$0xff] }
 0x109   : > { %1327 = vmatmul.mubr.bf16.gmra.mrb[24].mxu1 %v2756_v27 }
 0x10a   : > { %1520 = vmatmul.mubr.bf16.gmra.mrb[24].mxu0 %v2757_v28  ;;  %1336 = vmatprep.mubr.bf16.mxu1 %v2758_v29 }
 0x10b   : > { %1529 = vmatprep.mubr.bf16.mxu0 %v2760_v30  ;;  %v408_v30 = vld [vmem:[#allocation2 + $0x30] sm:$0xff] }
 0x111   : > { %1337 = vmatmul.mubr.bf16.gmra.mrb[28].mxu1 %v2762_v31 }
 0x112   : > { %1530 = vmatmul.mubr.bf16.gmra.mrb[28].mxu0 %v2763_v32  ;;  %1346 = vmatprep.mubr.bf16.mxu1 %v2764_v33 }
 0x113   : > { %1539 = vmatprep.mubr.bf16.mxu0 %v2766_v34 }
 0x119   : > { %1347 = vmatmul.mubr.bf16.gmra.mrb[32].mxu1 %v2768_v35  ;;  %v409_v35 = vld [vmem:[#allocation2 + $0x38] sm:$0xff] }
 0x11a   : > { %1540 = vmatmul.mubr.bf16.gmra.mrb[32].mxu0 %v2769_v36  ;;  %1356 = vmatprep.mubr.bf16.mxu1 %v2770_v37 }
 0x11b   : > { %1549 = vmatprep.mubr.bf16.mxu0 %v2772_v38 }
 0x121   : > { %1357 = vmatmul.mubr.bf16.gmra.mrb[36].mxu1 %v2774_v39 }
 0x122   : > { %1550 = vmatmul.mubr.bf16.gmra.mrb[36].mxu0 %v2775_v40  ;;  %1366 = vmatprep.mubr.bf16.mxu1 %v2776_v41 }
 0x123   : > { %1559 = vmatprep.mubr.bf16.mxu0 %v2778_v42  ;;  %v410_v42 = vld [vmem:[#allocation2 + $0x40] sm:$0xff] }
 0x129   : > { %1367 = vmatmul.mubr.bf16.gmra.mrb[40].mxu1 %v2780_v43 }
 0x12a   : > { %1560 = vmatmul.mubr.bf16.gmra.mrb[40].mxu0 %v2781_v44  ;;  %1376 = vmatprep.mubr.bf16.mxu1 %v2782_v45 }
 0x12b   : > { %1569 = vmatprep.mubr.bf16.mxu0 %v2784_v46  ;;  %v411_v46 = vld [vmem:[#allocation2 + $0x48] sm:$0xff] }
 0x131   : > { %1377 = vmatmul.mubr.bf16.gmra.mrb[44].mxu1 %v2786_v47 }
 0x132   : > { %1570 = vmatmul.mubr.bf16.gmra.mrb[44].mxu0 %v2787_v48  ;;  %1386 = vmatprep.mubr.bf16.mxu1 %v2788_v49 }
 0x133   : > { %1579 = vmatprep.mubr.bf16.mxu0 %v2790_v50  ;;  %v412_v50 = vld [vmem:[#allocation2 + $0x50] sm:$0xff] }
 0x139   : > { %1387 = vmatmul.mubr.bf16.gmra.mrb[48].mxu1 %v2792_v51 }
 0x13a   : > { %1580 = vmatmul.mubr.bf16.gmra.mrb[48].mxu0 %v2793_v52  ;;  %1396 = vmatprep.mubr.bf16.mxu1 %v2794_v53 }
 0x13b   : > { %1589 = vmatprep.mubr.bf16.mxu0 %v2796_v54 }
 0x141   : > { %1397 = vmatmul.mubr.bf16.gmra.mrb[52].mxu1 %v2798_v55  ;;  %v413_v55 = vld [vmem:[#allocation2 + $0x58] sm:$0xff] }
 0x142   : > { %1590 = vmatmul.mubr.bf16.gmra.mrb[52].mxu0 %v2799_v56  ;;  %1406 = vmatprep.mubr.bf16.mxu1 %v2800_v57 }
 0x143   : > { %1599 = vmatprep.mubr.bf16.mxu0 %v2802_v58 }
 0x149   : > { %1407 = vmatmul.mubr.bf16.gmra.mrb[56].mxu1 %v2804_v59 }
 0x14a   : > { %1600 = vmatmul.mubr.bf16.gmra.mrb[56].mxu0 %v2805_v60  ;;  %1416 = vmatprep.mubr.bf16.mxu1 %v2806_v61 }
 0x14b   : > { %1609 = vmatprep.mubr.bf16.mxu0 %v2808_v62  ;;  %v414_v62 = vld [vmem:[#allocation2 + $0x60] sm:$0xff] }
 0x151   : > { %1417 = vmatmul.mubr.bf16.gmra.mrb[60].mxu1 %v2810_v63 }
 0x152   : > { %1610 = vmatmul.mubr.bf16.gmra.mrb[60].mxu0 %v2811_v0 }
 0x1ac   : > { %v1268_v1 = vpop.f32.mrb[0].mxu1 }
 0x1ad   : > { %v1461_v3 = vpop.f32.mrb[0].mxu0  ;;  %v1270_v5 = vpop.f32.mrb[1].mxu1 }
 0x1ae   : > { %v1462_v4 = vadd.f32 %v1461_v3, %v1268_v1  ;;  %v1463_v7 = vpop.f32.mrb[1].mxu0  ;;  %v1272_v9 = vpop.f32.mrb[2].mxu1 }
 0x1af   : > { %v1464_v8 = vadd.f32 %v1463_v7, %v1270_v5  ;;  %v1465_v11 = vpop.f32.mrb[2].mxu0  ;;  %v1274_v14 = vpop.f32.mrb[3].mxu1 }
 0x1b0   : > { %v1620_v12 = vadd.f32 %v1462_v4, %v402_v2  ;;  %v1466_v13 = vadd.f32 %v1465_v11, %v1272_v9  ;;  %v1467_v16 = vpop.f32.mrb[3].mxu0  ;;  %v415_v2 = vld [vmem:[#allocation2 + $0x68] sm:$0xff]  ;;  %v417_v11 = vld [vmem:[#allocation2 + $0x78] sm:$0xff] }
 0x1b1   : > { %v1621_v17 = vadd.f32 %v1464_v8, %v403_v6  ;;  %v1468_v18 = vadd.f32 %v1467_v16, %v1274_v14  ;;  %v416_v6 = vld [vmem:[#allocation2 + $0x70] sm:$0xff] }
 0x1b2   : > { %1684 = vst [vmem:[#allocation2] sm:$0xff] %v1620_v12  ;;  %v1622_v19 = vadd.f32 %v1466_v13, %v404_v10 }
 0x1b3   : > { %1685 = vst [vmem:[#allocation2 + $0x8] sm:$0xff] %v1621_v17  ;;  %v1623_v20 = vadd.f32 %v1468_v18, %v405_v15  ;;  %v418_v18 = vld [vmem:[#allocation2 + $0x80] sm:$0xff] }
 0x1b4   : > { %1686 = vst [vmem:[#allocation2 + $0x10] sm:$0xff] %v1622_v19  ;;  %v1278_v21 = vpop.f32.mrb[4].mxu1 }
 0x1b5   : > { %1687 = vst [vmem:[#allocation2 + $0x18] sm:$0xff] %v1623_v20  ;;  %v1471_v23 = vpop.f32.mrb[4].mxu0  ;;  %v1280_v25 = vpop.f32.mrb[5].mxu1 }
 0x1b6   : > { %v1472_v24 = vadd.f32 %v1471_v23, %v1278_v21  ;;  %v1473_v27 = vpop.f32.mrb[5].mxu0  ;;  %v1282_v29 = vpop.f32.mrb[6].mxu1 }
 0x1b7   : > { %v1474_v28 = vadd.f32 %v1473_v27, %v1280_v25  ;;  %v1475_v31 = vpop.f32.mrb[6].mxu0  ;;  %v1284_v34 = vpop.f32.mrb[7].mxu1 }
 0x1b8   : > { %v1624_v32 = vadd.f32 %v1472_v24, %v406_v22  ;;  %v1476_v33 = vadd.f32 %v1475_v31, %v1282_v29  ;;  %v1477_v36 = vpop.f32.mrb[7].mxu0  ;;  %v419_v22 = vld [vmem:[#allocation2 + $0x88] sm:$0xff]  ;;  %v421_v31 = vld [vmem:[#allocation2 + $0x98] sm:$0xff] }
 0x1b9   : > { %v1625_v37 = vadd.f32 %v1474_v28, %v407_v26  ;;  %v1478_v38 = vadd.f32 %v1477_v36, %v1284_v34  ;;  %v420_v26 = vld [vmem:[#allocation2 + $0x90] sm:$0xff] }
 0x1ba   : > { %1688 = vst [vmem:[#allocation2 + $0x20] sm:$0xff] %v1624_v32  ;;  %v1626_v39 = vadd.f32 %v1476_v33, %v408_v30 }
 0x1bb   : > { %1689 = vst [vmem:[#allocation2 + $0x28] sm:$0xff] %v1625_v37  ;;  %v1627_v40 = vadd.f32 %v1478_v38, %v409_v35  ;;  %v422_v38 = vld [vmem:[#allocation2 + $0xa0] sm:$0xff] }
 0x1bc   : > { %1690 = vst [vmem:[#allocation2 + $0x30] sm:$0xff] %v1626_v39  ;;  %v1288_v41 = vpop.f32.mrb[8].mxu1 }
 0x1bd   : > { %1691 = vst [vmem:[#allocation2 + $0x38] sm:$0xff] %v1627_v40  ;;  %v1481_v43 = vpop.f32.mrb[8].mxu0  ;;  %v1290_v45 = vpop.f32.mrb[9].mxu1 }
 0x1be   : > { %v1482_v44 = vadd.f32 %v1481_v43, %v1288_v41  ;;  %v1483_v47 = vpop.f32.mrb[9].mxu0  ;;  %v1292_v49 = vpop.f32.mrb[10].mxu1 }
 0x1bf   : > { %v1484_v48 = vadd.f32 %v1483_v47, %v1290_v45  ;;  %v1485_v51 = vpop.f32.mrb[10].mxu0  ;;  %v1294_v54 = vpop.f32.mrb[11].mxu1 }
 0x1c0   : > { %v1628_v52 = vadd.f32 %v1482_v44, %v410_v42  ;;  %v1486_v53 = vadd.f32 %v1485_v51, %v1292_v49  ;;  %v1487_v56 = vpop.f32.mrb[11].mxu0  ;;  %v423_v42 = vld [vmem:[#allocation2 + $0xa8] sm:$0xff]  ;;  %v425_v51 = vld [vmem:[#allocation2 + $0xb8] sm:$0xff] }
 0x1c1   : > { %v1629_v57 = vadd.f32 %v1484_v48, %v411_v46  ;;  %v1488_v58 = vadd.f32 %v1487_v56, %v1294_v54  ;;  %v424_v46 = vld [vmem:[#allocation2 + $0xb0] sm:$0xff] }
 0x1c2   : > { %1692 = vst [vmem:[#allocation2 + $0x40] sm:$0xff] %v1628_v52  ;;  %v1630_v59 = vadd.f32 %v1486_v53, %v412_v50 }
 0x1c3   : > { %1693 = vst [vmem:[#allocation2 + $0x48] sm:$0xff] %v1629_v57  ;;  %v1631_v60 = vadd.f32 %v1488_v58, %v413_v55  ;;  %v426_v58 = vld [vmem:[#allocation2 + $0xc0] sm:$0xff] }
 0x1c4   : > { %1694 = vst [vmem:[#allocation2 + $0x50] sm:$0xff] %v1630_v59  ;;  %v1298_v61 = vpop.f32.mrb[12].mxu1 }
 0x1c5   : > { %1695 = vst [vmem:[#allocation2 + $0x58] sm:$0xff] %v1631_v60  ;;  %v1491_v63 = vpop.f32.mrb[12].mxu0  ;;  %v1300_v1 = vpop.f32.mrb[13].mxu1 }
 0x1c6   : > { %v1492_v0 = vadd.f32 %v1491_v63, %v1298_v61  ;;  %v1493_v3 = vpop.f32.mrb[13].mxu0  ;;  %v1302_v5 = vpop.f32.mrb[14].mxu1 }
 0x1c7   : > { %v1494_v4 = vadd.f32 %v1493_v3, %v1300_v1  ;;  %v1495_v7 = vpop.f32.mrb[14].mxu0  ;;  %v1304_v10 = vpop.f32.mrb[15].mxu1 }
 0x1c8   : > { %v1632_v8 = vadd.f32 %v1492_v0, %v414_v62  ;;  %v1496_v9 = vadd.f32 %v1495_v7, %v1302_v5  ;;  %v1497_v12 = vpop.f32.mrb[15].mxu0  ;;  %v427_v62 = vld [vmem:[#allocation2 + $0xc8] sm:$0xff]  ;;  %v429_v7 = vld [vmem:[#allocation2 + $0xd8] sm:$0xff] }
 0x1c9   : > { %v1633_v13 = vadd.f32 %v1494_v4, %v415_v2  ;;  %v1498_v14 = vadd.f32 %v1497_v12, %v1304_v10  ;;  %v428_v2 = vld [vmem:[#allocation2 + $0xd0] sm:$0xff] }
 0x1ca   : > { %1696 = vst [vmem:[#allocation2 + $0x60] sm:$0xff] %v1632_v8  ;;  %v1634_v15 = vadd.f32 %v1496_v9, %v416_v6 }
 0x1cb   : > { %1697 = vst [vmem:[#allocation2 + $0x68] sm:$0xff] %v1633_v13  ;;  %v1635_v16 = vadd.f32 %v1498_v14, %v417_v11  ;;  %v430_v14 = vld [vmem:[#allocation2 + $0xe0] sm:$0xff] }
 0x1cc   : > { %1698 = vst [vmem:[#allocation2 + $0x70] sm:$0xff] %v1634_v15  ;;  %v1308_v17 = vpop.f32.mrb[16].mxu1 }
 0x1cd   : > { %1699 = vst [vmem:[#allocation2 + $0x78] sm:$0xff] %v1635_v16  ;;  %v1501_v19 = vpop.f32.mrb[16].mxu0  ;;  %v1310_v21 = vpop.f32.mrb[17].mxu1 }
 0x1ce   : > { %v1502_v20 = vadd.f32 %v1501_v19, %v1308_v17  ;;  %v1503_v23 = vpop.f32.mrb[17].mxu0  ;;  %v1312_v25 = vpop.f32.mrb[18].mxu1 }
 0x1cf   : > { %v1504_v24 = vadd.f32 %v1503_v23, %v1310_v21  ;;  %v1505_v27 = vpop.f32.mrb[18].mxu0  ;;  %v1314_v30 = vpop.f32.mrb[19].mxu1 }
 0x1d0   : > { %v1636_v28 = vadd.f32 %v1502_v20, %v418_v18  ;;  %v1506_v29 = vadd.f32 %v1505_v27, %v1312_v25  ;;  %v1507_v32 = vpop.f32.mrb[19].mxu0  ;;  %v431_v18 = vld [vmem:[#allocation2 + $0xe8] sm:$0xff]  ;;  %v433_v27 = vld [vmem:[#allocation2 + $0xf8] sm:$0xff] }
 0x1d1   : > { %v1637_v33 = vadd.f32 %v1504_v24, %v419_v22  ;;  %v1508_v34 = vadd.f32 %v1507_v32, %v1314_v30  ;;  %v432_v22 = vld [vmem:[#allocation2 + $0xf0] sm:$0xff] }
 0x1d2   : > { %1700 = vst [vmem:[#allocation2 + $0x80] sm:$0xff] %v1636_v28  ;;  %v1638_v35 = vadd.f32 %v1506_v29, %v420_v26 }
 0x1d3   : > { %1701 = vst [vmem:[#allocation2 + $0x88] sm:$0xff] %v1637_v33  ;;  %v1639_v36 = vadd.f32 %v1508_v34, %v421_v31  ;;  %v434_v34 = vld [vmem:[#allocation2 + $0x100] sm:$0xff] }
 0x1d4   : > { %1702 = vst [vmem:[#allocation2 + $0x90] sm:$0xff] %v1638_v35  ;;  %v1318_v37 = vpop.f32.mrb[20].mxu1 }
 0x1d5   : > { %1703 = vst [vmem:[#allocation2 + $0x98] sm:$0xff] %v1639_v36  ;;  %v1511_v39 = vpop.f32.mrb[20].mxu0  ;;  %v1320_v41 = vpop.f32.mrb[21].mxu1 }
 0x1d6   : > { %v1512_v40 = vadd.f32 %v1511_v39, %v1318_v37  ;;  %v1513_v43 = vpop.f32.mrb[21].mxu0  ;;  %v1322_v45 = vpop.f32.mrb[22].mxu1 }
 0x1d7   : > { %v1514_v44 = vadd.f32 %v1513_v43, %v1320_v41  ;;  %v1515_v47 = vpop.f32.mrb[22].mxu0  ;;  %v1324_v50 = vpop.f32.mrb[23].mxu1 }
 0x1d8   : > { %v1640_v48 = vadd.f32 %v1512_v40, %v422_v38  ;;  %v1516_v49 = vadd.f32 %v1515_v47, %v1322_v45  ;;  %v1517_v52 = vpop.f32.mrb[23].mxu0  ;;  %v435_v38 = vld [vmem:[#allocation2 + $0x108] sm:$0xff]  ;;  %v437_v47 = vld [vmem:[#allocation2 + $0x118] sm:$0xff] }
 0x1d9   : > { %v1641_v53 = vadd.f32 %v1514_v44, %v423_v42  ;;  %v1518_v54 = vadd.f32 %v1517_v52, %v1324_v50  ;;  %v436_v42 = vld [vmem:[#allocation2 + $0x110] sm:$0xff] }
 0x1da   : > { %1704 = vst [vmem:[#allocation2 + $0xa0] sm:$0xff] %v1640_v48  ;;  %v1642_v55 = vadd.f32 %v1516_v49, %v424_v46 }
 0x1db   : > { %1705 = vst [vmem:[#allocation2 + $0xa8] sm:$0xff] %v1641_v53  ;;  %v1643_v56 = vadd.f32 %v1518_v54, %v425_v51  ;;  %v438_v54 = vld [vmem:[#allocation2 + $0x120] sm:$0xff] }
 0x1dc   : > { %1706 = vst [vmem:[#allocation2 + $0xb0] sm:$0xff] %v1642_v55  ;;  %v1328_v57 = vpop.f32.mrb[24].mxu1 }
 0x1dd   : > { %1707 = vst [vmem:[#allocation2 + $0xb8] sm:$0xff] %v1643_v56  ;;  %v1521_v59 = vpop.f32.mrb[24].mxu0  ;;  %v1330_v61 = vpop.f32.mrb[25].mxu1 }
 0x1de   : > { %v1522_v60 = vadd.f32 %v1521_v59, %v1328_v57  ;;  %v1523_v63 = vpop.f32.mrb[25].mxu0  ;;  %v1332_v1 = vpop.f32.mrb[26].mxu1 }
 0x1df   : > { %v1524_v0 = vadd.f32 %v1523_v63, %v1330_v61  ;;  %v1525_v3 = vpop.f32.mrb[26].mxu0  ;;  %v1334_v6 = vpop.f32.mrb[27].mxu1 }
 0x1e0   : > { %v1644_v4 = vadd.f32 %v1522_v60, %v426_v58  ;;  %v1526_v5 = vadd.f32 %v1525_v3, %v1332_v1  ;;  %v1527_v8 = vpop.f32.mrb[27].mxu0  ;;  %v439_v58 = vld [vmem:[#allocation2 + $0x128] sm:$0xff]  ;;  %v441_v3 = vld [vmem:[#allocation2 + $0x138] sm:$0xff] }
 0x1e1   : > { %v1645_v9 = vadd.f32 %v1524_v0, %v427_v62  ;;  %v1528_v10 = vadd.f32 %v1527_v8, %v1334_v6  ;;  %v440_v62 = vld [vmem:[#allocation2 + $0x130] sm:$0xff] }
 0x1e2   : > { %1708 = vst [vmem:[#allocation2 + $0xc0] sm:$0xff] %v1644_v4  ;;  %v1646_v11 = vadd.f32 %v1526_v5, %v428_v2 }
 0x1e3   : > { %1709 = vst [vmem:[#allocation2 + $0xc8] sm:$0xff] %v1645_v9  ;;  %v1647_v12 = vadd.f32 %v1528_v10, %v429_v7  ;;  %v442_v10 = vld [vmem:[#allocation2 + $0x140] sm:$0xff] }
 0x1e4   : > { %1710 = vst [vmem:[#allocation2 + $0xd0] sm:$0xff] %v1646_v11  ;;  %v1338_v13 = vpop.f32.mrb[28].mxu1 }
 0x1e5   : > { %1711 = vst [vmem:[#allocation2 + $0xd8] sm:$0xff] %v1647_v12  ;;  %v1531_v15 = vpop.f32.mrb[28].mxu0  ;;  %v1340_v17 = vpop.f32.mrb[29].mxu1 }
 0x1e6   : > { %v1532_v16 = vadd.f32 %v1531_v15, %v1338_v13  ;;  %v1533_v19 = vpop.f32.mrb[29].mxu0  ;;  %v1342_v21 = vpop.f32.mrb[30].mxu1 }
 0x1e7   : > { %v1534_v20 = vadd.f32 %v1533_v19, %v1340_v17  ;;  %v1535_v23 = vpop.f32.mrb[30].mxu0  ;;  %v1344_v26 = vpop.f32.mrb[31].mxu1 }
 0x1e8   : > { %v1648_v24 = vadd.f32 %v1532_v16, %v430_v14  ;;  %v1536_v25 = vadd.f32 %v1535_v23, %v1342_v21  ;;  %v1537_v28 = vpop.f32.mrb[31].mxu0  ;;  %v443_v14 = vld [vmem:[#allocation2 + $0x148] sm:$0xff]  ;;  %v445_v23 = vld [vmem:[#allocation2 + $0x158] sm:$0xff] }
 0x1e9   : > { %v1649_v29 = vadd.f32 %v1534_v20, %v431_v18  ;;  %v1538_v30 = vadd.f32 %v1537_v28, %v1344_v26  ;;  %v444_v18 = vld [vmem:[#allocation2 + $0x150] sm:$0xff] }
 0x1ea   : > { %1712 = vst [vmem:[#allocation2 + $0xe0] sm:$0xff] %v1648_v24  ;;  %v1650_v31 = vadd.f32 %v1536_v25, %v432_v22 }
 0x1eb   : > { %1713 = vst [vmem:[#allocation2 + $0xe8] sm:$0xff] %v1649_v29  ;;  %v1651_v32 = vadd.f32 %v1538_v30, %v433_v27  ;;  %v446_v30 = vld [vmem:[#allocation2 + $0x160] sm:$0xff] }
 0x1ec   : > { %1714 = vst [vmem:[#allocation2 + $0xf0] sm:$0xff] %v1650_v31  ;;  %v1348_v33 = vpop.f32.mrb[32].mxu1 }
 0x1ed   : > { %1715 = vst [vmem:[#allocation2 + $0xf8] sm:$0xff] %v1651_v32  ;;  %v1541_v35 = vpop.f32.mrb[32].mxu0  ;;  %v1350_v37 = vpop.f32.mrb[33].mxu1 }
 0x1ee   : > { %v1542_v36 = vadd.f32 %v1541_v35, %v1348_v33  ;;  %v1543_v39 = vpop.f32.mrb[33].mxu0  ;;  %v1352_v41 = vpop.f32.mrb[34].mxu1 }
 0x1ef   : > { %v1544_v40 = vadd.f32 %v1543_v39, %v1350_v37  ;;  %v1545_v43 = vpop.f32.mrb[34].mxu0  ;;  %v1354_v46 = vpop.f32.mrb[35].mxu1 }
 0x1f0   : > { %v1652_v44 = vadd.f32 %v1542_v36, %v434_v34  ;;  %v1546_v45 = vadd.f32 %v1545_v43, %v1352_v41  ;;  %v1547_v48 = vpop.f32.mrb[35].mxu0  ;;  %v447_v34 = vld [vmem:[#allocation2 + $0x168] sm:$0xff]  ;;  %v449_v43 = vld [vmem:[#allocation2 + $0x178] sm:$0xff] }
 0x1f1   : > { %v1653_v49 = vadd.f32 %v1544_v40, %v435_v38  ;;  %v1548_v50 = vadd.f32 %v1547_v48, %v1354_v46  ;;  %v448_v38 = vld [vmem:[#allocation2 + $0x170] sm:$0xff] }
 0x1f2   : > { %1716 = vst [vmem:[#allocation2 + $0x100] sm:$0xff] %v1652_v44  ;;  %v1654_v51 = vadd.f32 %v1546_v45, %v436_v42 }
 0x1f3   : > { %1717 = vst [vmem:[#allocation2 + $0x108] sm:$0xff] %v1653_v49  ;;  %v1655_v52 = vadd.f32 %v1548_v50, %v437_v47  ;;  %v450_v50 = vld [vmem:[#allocation2 + $0x180] sm:$0xff] }
 0x1f4   : > { %1718 = vst [vmem:[#allocation2 + $0x110] sm:$0xff] %v1654_v51  ;;  %v1358_v53 = vpop.f32.mrb[36].mxu1 }
 0x1f5   : > { %1719 = vst [vmem:[#allocation2 + $0x118] sm:$0xff] %v1655_v52  ;;  %v1551_v55 = vpop.f32.mrb[36].mxu0  ;;  %v1360_v57 = vpop.f32.mrb[37].mxu1 }
 0x1f6   : > { %v1552_v56 = vadd.f32 %v1551_v55, %v1358_v53  ;;  %v1553_v59 = vpop.f32.mrb[37].mxu0  ;;  %v1362_v61 = vpop.f32.mrb[38].mxu1 }
 0x1f7   : > { %v1554_v60 = vadd.f32 %v1553_v59, %v1360_v57  ;;  %v1555_v63 = vpop.f32.mrb[38].mxu0  ;;  %v1364_v2 = vpop.f32.mrb[39].mxu1 }
 0x1f8   : > { %v1656_v0 = vadd.f32 %v1552_v56, %v438_v54  ;;  %v1556_v1 = vadd.f32 %v1555_v63, %v1362_v61  ;;  %v1557_v4 = vpop.f32.mrb[39].mxu0  ;;  %v451_v54 = vld [vmem:[#allocation2 + $0x188] sm:$0xff]  ;;  %v453_v63 = vld [vmem:[#allocation2 + $0x198] sm:$0xff] }
 0x1f9   : > { %v1657_v5 = vadd.f32 %v1554_v60, %v439_v58  ;;  %v1558_v6 = vadd.f32 %v1557_v4, %v1364_v2  ;;  %v452_v58 = vld [vmem:[#allocation2 + $0x190] sm:$0xff] }
 0x1fa   : > { %1720 = vst [vmem:[#allocation2 + $0x120] sm:$0xff] %v1656_v0  ;;  %v1658_v7 = vadd.f32 %v1556_v1, %v440_v62 }
 0x1fb   : > { %1721 = vst [vmem:[#allocation2 + $0x128] sm:$0xff] %v1657_v5  ;;  %v1659_v8 = vadd.f32 %v1558_v6, %v441_v3  ;;  %v454_v6 = vld [vmem:[#allocation2 + $0x1a0] sm:$0xff] }
 0x1fc   : > { %1722 = vst [vmem:[#allocation2 + $0x130] sm:$0xff] %v1658_v7  ;;  %v1368_v9 = vpop.f32.mrb[40].mxu1 }
 0x1fd   : > { %1723 = vst [vmem:[#allocation2 + $0x138] sm:$0xff] %v1659_v8  ;;  %v1561_v11 = vpop.f32.mrb[40].mxu0  ;;  %v1370_v13 = vpop.f32.mrb[41].mxu1 }
 0x1fe   : > { %v1562_v12 = vadd.f32 %v1561_v11, %v1368_v9  ;;  %v1563_v15 = vpop.f32.mrb[41].mxu0  ;;  %v1372_v17 = vpop.f32.mrb[42].mxu1 }
 0x1ff   : > { %v1564_v16 = vadd.f32 %v1563_v15, %v1370_v13  ;;  %v1565_v19 = vpop.f32.mrb[42].mxu0  ;;  %v1374_v22 = vpop.f32.mrb[43].mxu1 }
 0x200   : > { %v1660_v20 = vadd.f32 %v1562_v12, %v442_v10  ;;  %v1566_v21 = vadd.f32 %v1565_v19, %v1372_v17  ;;  %v1567_v24 = vpop.f32.mrb[43].mxu0  ;;  %v455_v10 = vld [vmem:[#allocation2 + $0x1a8] sm:$0xff]  ;;  %v457_v19 = vld [vmem:[#allocation2 + $0x1b8] sm:$0xff] }
 0x201   : > { %v1661_v25 = vadd.f32 %v1564_v16, %v443_v14  ;;  %v1568_v26 = vadd.f32 %v1567_v24, %v1374_v22  ;;  %v456_v14 = vld [vmem:[#allocation2 + $0x1b0] sm:$0xff] }
 0x202   : > { %1724 = vst [vmem:[#allocation2 + $0x140] sm:$0xff] %v1660_v20  ;;  %v1662_v27 = vadd.f32 %v1566_v21, %v444_v18 }
 0x203   : > { %1725 = vst [vmem:[#allocation2 + $0x148] sm:$0xff] %v1661_v25  ;;  %v1663_v28 = vadd.f32 %v1568_v26, %v445_v23  ;;  %v458_v26 = vld [vmem:[#allocation2 + $0x1c0] sm:$0xff] }
 0x204   : > { %1726 = vst [vmem:[#allocation2 + $0x150] sm:$0xff] %v1662_v27  ;;  %v1378_v29 = vpop.f32.mrb[44].mxu1 }
 0x205   : > { %1727 = vst [vmem:[#allocation2 + $0x158] sm:$0xff] %v1663_v28  ;;  %v1571_v31 = vpop.f32.mrb[44].mxu0  ;;  %v1380_v33 = vpop.f32.mrb[45].mxu1 }
 0x206   : > { %v1572_v32 = vadd.f32 %v1571_v31, %v1378_v29  ;;  %v1573_v35 = vpop.f32.mrb[45].mxu0  ;;  %v1382_v37 = vpop.f32.mrb[46].mxu1 }
 0x207   : > { %v1574_v36 = vadd.f32 %v1573_v35, %v1380_v33  ;;  %v1575_v39 = vpop.f32.mrb[46].mxu0  ;;  %v1384_v42 = vpop.f32.mrb[47].mxu1 }
 0x208   : > { %v1664_v40 = vadd.f32 %v1572_v32, %v446_v30  ;;  %v1576_v41 = vadd.f32 %v1575_v39, %v1382_v37  ;;  %v1577_v44 = vpop.f32.mrb[47].mxu0  ;;  %v459_v30 = vld [vmem:[#allocation2 + $0x1c8] sm:$0xff]  ;;  %v461_v39 = vld [vmem:[#allocation2 + $0x1d8] sm:$0xff] }
 0x209   : > { %v1665_v45 = vadd.f32 %v1574_v36, %v447_v34  ;;  %v1578_v46 = vadd.f32 %v1577_v44, %v1384_v42  ;;  %v460_v34 = vld [vmem:[#allocation2 + $0x1d0] sm:$0xff] }
 0x20a   : > { %1728 = vst [vmem:[#allocation2 + $0x160] sm:$0xff] %v1664_v40  ;;  %v1666_v47 = vadd.f32 %v1576_v41, %v448_v38 }
 0x20b   : > { %1729 = vst [vmem:[#allocation2 + $0x168] sm:$0xff] %v1665_v45  ;;  %v1667_v48 = vadd.f32 %v1578_v46, %v449_v43  ;;  %v462_v46 = vld [vmem:[#allocation2 + $0x1e0] sm:$0xff] }
 0x20c   : > { %1730 = vst [vmem:[#allocation2 + $0x170] sm:$0xff] %v1666_v47  ;;  %v1388_v49 = vpop.f32.mrb[48].mxu1 }
 0x20d   : > { %1731 = vst [vmem:[#allocation2 + $0x178] sm:$0xff] %v1667_v48  ;;  %v1581_v51 = vpop.f32.mrb[48].mxu0  ;;  %v1390_v53 = vpop.f32.mrb[49].mxu1 }
 0x20e   : > { %v1582_v52 = vadd.f32 %v1581_v51, %v1388_v49  ;;  %v1583_v55 = vpop.f32.mrb[49].mxu0  ;;  %v1392_v57 = vpop.f32.mrb[50].mxu1 }
 0x20f   : > { %v1584_v56 = vadd.f32 %v1583_v55, %v1390_v53  ;;  %v1585_v59 = vpop.f32.mrb[50].mxu0  ;;  %v1394_v62 = vpop.f32.mrb[51].mxu1 }
 0x210   : > { %v1668_v60 = vadd.f32 %v1582_v52, %v450_v50  ;;  %v1586_v61 = vadd.f32 %v1585_v59, %v1392_v57  ;;  %v1587_v0 = vpop.f32.mrb[51].mxu0  ;;  %v463_v50 = vld [vmem:[#allocation2 + $0x1e8] sm:$0xff]  ;;  %v465_v59 = vld [vmem:[#allocation2 + $0x1f8] sm:$0xff] }
 0x211   : > { %v1669_v1 = vadd.f32 %v1584_v56, %v451_v54  ;;  %v1588_v2 = vadd.f32 %v1587_v0, %v1394_v62  ;;  %v464_v54 = vld [vmem:[#allocation2 + $0x1f0] sm:$0xff] }
 0x212   : > { %1732 = vst [vmem:[#allocation2 + $0x180] sm:$0xff] %v1668_v60  ;;  %v1670_v3 = vadd.f32 %v1586_v61, %v452_v58 }
 0x213   : > { %1733 = vst [vmem:[#allocation2 + $0x188] sm:$0xff] %v1669_v1  ;;  %v1671_v4 = vadd.f32 %v1588_v2, %v453_v63  ;;  %v1818_v1 = vlaneseq (!%p2462_p6)  ;;  %v1892_v2 = vld [vmem:[#allocation8] sm:$0xff] (!%p2462_p6) }
 0x214   : > { %1734 = vst [vmem:[#allocation2 + $0x190] sm:$0xff] %v1670_v3  ;;  %v1398_v5 = vpop.f32.mrb[52].mxu1  ;;  %v1893_v3 = vld [vmem:[#allocation8 + $0x8] sm:$0xff] (!%p2462_p6) }
 0x215   : > { %1735 = vst [vmem:[#allocation2 + $0x198] sm:$0xff] %v1671_v4  ;;  %v1591_v7 = vpop.f32.mrb[52].mxu0  ;;  %v1400_v9 = vpop.f32.mrb[53].mxu1  ;;  %v1819_v4 = vshrl.u32 (!%p2462_p6), %v1818_v1, 7 }
 0x216   : > { %v1592_v8 = vadd.f32 %v1591_v7, %v1398_v5  ;;  %v1593_v11 = vpop.f32.mrb[53].mxu0  ;;  %v1402_v13 = vpop.f32.mrb[54].mxu1  ;;  %v1894_v5 = vld [vmem:[#allocation8 + $0x10] sm:$0xff] (!%p2462_p6)  ;;  %v1816_v7 = vld [vmem:[%s3535_s2] sm:$0x3] (!%p2462_p6) }
 0x217   : > { %v1594_v12 = vadd.f32 %v1593_v11, %v1400_v9  ;;  %v1595_v15 = vpop.f32.mrb[54].mxu0  ;;  %v1404_v18 = vpop.f32.mrb[55].mxu1  ;;  %v1753_v9 = vld [vmem:[#allocation2 + $0x8] sm:$0xff] (!%p2462_p6)  ;;  %v1895_v11 = vld [vmem:[#allocation8 + $0x18] sm:$0xff] (!%p2462_p6) }
 0x218   : > { %v1672_v16 = vadd.f32 %v1592_v8, %v454_v6  ;;  %v1596_v17 = vadd.f32 %v1595_v15, %v1402_v13  ;;  %v1597_v20 = vpop.f32.mrb[55].mxu0  ;;  %v1752_v6 = vld [vmem:[#allocation2] sm:$0xff] (!%p2462_p6)  ;;  %v1924_v8 = vunpack.c.l.bf16 (!%p2462_p6), %v1892_v2  ;;  %v1824_v13 = vsub.s32 (!%p2462_p6), 1, %v1819_v4 }
 0x219   : > { %v1673_v21 = vadd.f32 %v1594_v12, %v455_v10  ;;  %v1598_v22 = vadd.f32 %v1597_v20, %v1404_v18  ;;  %v1925_v10 = vunpack.c.h.bf16 (!%p2462_p6), %v1892_v2  ;;  %v1820_v12 = vsub.s32 (!%p2462_p6), 0, %v1819_v4  ;;  %v3416_v18 = vld [vmem:[#allocation8 + $0x20] sm:$0xff] (!%p2462_p6) }
 0x21a   : > { %1736 = vst [vmem:[#allocation2 + $0x1a0] sm:$0xff] %v1672_v16  ;;  %v1674_v23 = vadd.f32 %v1596_v17, %v456_v14  ;;  %v1754_v14 = vld [vmem:[#allocation2 + $0x10] sm:$0xff] (!%p2462_p6)  ;;  %v1926_v15 = vunpack.c.l.bf16 (!%p2462_p6), %v1893_v3  ;;  %v1755_v16 = vld [vmem:[#allocation2 + $0x18] sm:$0xff] (!%p2462_p6)  ;;  %v1927_v17 = vunpack.c.h.bf16 (!%p2462_p6), %v1893_v3  ;;  %v1928_v20 = vunpack.c.l.bf16 (!%p2462_p6), %v1894_v5 }
 0x21b   : > { %1737 = vst [vmem:[#allocation2 + $0x1a8] sm:$0xff] %v1673_v21  ;;  %v1675_v24 = vadd.f32 %v1598_v22, %v457_v19  ;;  %v1756_v19 = vld [vmem:[#allocation2 + $0x20] sm:$0xff] (!%p2462_p6)  ;;  %v1757_v21 = vld [vmem:[#allocation2 + $0x28] sm:$0xff] (!%p2462_p6)  ;;  %v1929_v22 = vunpack.c.h.bf16 (!%p2462_p6), %v1894_v5 }
 0x21c   : > { %1738 = vst [vmem:[#allocation2 + $0x1b0] sm:$0xff] %v1674_v23  ;;  %v1408_v25 = vpop.f32.mrb[56].mxu1  ;;  %v1930_v23 = vunpack.c.l.bf16 (!%p2462_p6), %v1895_v11 }
 0x21d   : > { %1739 = vst [vmem:[#allocation2 + $0x1b8] sm:$0xff] %v1675_v24  ;;  %v1601_v27 = vpop.f32.mrb[56].mxu0  ;;  %v1410_v29 = vpop.f32.mrb[57].mxu1  ;;  %v1931_v24 = vunpack.c.h.bf16 (!%p2462_p6), %v1895_v11 }
 0x21e   : > { %v1602_v28 = vadd.f32 %v1601_v27, %v1408_v25  ;;  %v1603_v31 = vpop.f32.mrb[57].mxu0  ;;  %v1412_v33 = vpop.f32.mrb[58].mxu1  ;;  %v3418_v25 = vld [vmem:[#allocation8 + $0x28] sm:$0xff] (!%p2462_p6)  ;;  %v3422_v27 = vrot.slane (!%p2462_p6), %v1816_v7, %v1824_v13 }
 0x21f   : > { %v1604_v32 = vadd.f32 %v1603_v31, %v1410_v29  ;;  %v1605_v35 = vpop.f32.mrb[58].mxu0  ;;  %v1414_v38 = vpop.f32.mrb[59].mxu1  ;;  %v1759_v29 = vld [vmem:[#allocation2 + $0x38] sm:$0xff] (!%p2462_p6)  ;;  %v1933_v31 = vunpack.c.h.bf16 (!%p2462_p6), %v3416_v18 }
 0x220   : > { %v1676_v36 = vadd.f32 %v1602_v28, %v458_v26  ;;  %v1606_v37 = vadd.f32 %v1605_v35, %v1412_v33  ;;  %v1607_v40 = vpop.f32.mrb[59].mxu0  ;;  %v3420_v26 = vrot.slane (!%p2462_p6), %v1816_v7, %v1820_v12  ;;  %v1758_v28 = vld [vmem:[#allocation2 + $0x30] sm:$0xff] (!%p2462_p6)  ;;  %v1934_v33 = vunpack.c.l.bf16 (!%p2462_p6), %v3418_v25 }
 0x221   : > { %v1677_v41 = vadd.f32 %v1604_v32, %v459_v30  ;;  %v1608_v42 = vadd.f32 %v1607_v40, %v1414_v38  ;;  %v1932_v30 = vunpack.c.l.bf16 (!%p2462_p6), %v3416_v18  ;;  %v1898_v32 = vld [vmem:[#allocation8 + $0x30] sm:$0xff] (!%p2462_p6)  ;;  %v1829_v38 = vadd.f32 (!%p2462_p6), %v3422_v27, %v1753_v9  ;;  %v1767_v9 = vld [vmem:[#allocation2 + $0x78] sm:$0xff] (!%p2462_p6)  ;;  %v1768_v18 = vld [vmem:[#allocation2 + $0x80] sm:$0xff] (!%p2462_p6) }
 0x222   : > { %1740 = vst [vmem:[#allocation2 + $0x1c0] sm:$0xff] %v1676_v36  ;;  %v1678_v43 = vadd.f32 %v1606_v37, %v460_v34  ;;  %v1935_v34 = vunpack.c.h.bf16 (!%p2462_p6), %v3418_v25  ;;  %v1936_v35 = vunpack.c.l.bf16 (!%p2462_p6), %v1898_v32  ;;  %v1937_v36 = vunpack.c.h.bf16 (!%p2462_p6), %v1898_v32  ;;  %v1770_v25 = vld [vmem:[#allocation2 + $0x90] sm:$0xff] (!%p2462_p6) }
 0x223   : > { %1741 = vst [vmem:[#allocation2 + $0x1c8] sm:$0xff] %v1677_v41  ;;  %v1679_v44 = vadd.f32 %v1608_v42, %v461_v39  ;;  %v1828_v37 = vadd.f32 (!%p2462_p6), %v3420_v26, %v1752_v6  ;;  %v1830_v39 = vadd.f32 (!%p2462_p6), %v3420_v26, %v1754_v14  ;;  %v1831_v40 = vadd.f32 (!%p2462_p6), %v3422_v27, %v1755_v16 }
 0x224   : > { %1742 = vst [vmem:[#allocation2 + $0x1d0] sm:$0xff] %v1678_v43  ;;  %v1418_v45 = vpop.f32.mrb[60].mxu1  ;;  %v1832_v41 = vadd.f32 (!%p2462_p6), %v3420_v26, %v1756_v19  ;;  %v1833_v42 = vadd.f32 (!%p2462_p6), %v3422_v27, %v1757_v21  ;;  %v1834_v43 = vadd.f32 (!%p2462_p6), %v3420_v26, %v1758_v28 }
 0x225   : > { %1743 = vst [vmem:[#allocation2 + $0x1d8] sm:$0xff] %v1679_v44  ;;  %v1611_v47 = vpop.f32.mrb[60].mxu0  ;;  %v1420_v49 = vpop.f32.mrb[61].mxu1  ;;  %v1835_v44 = vadd.f32 (!%p2462_p6), %v3422_v27, %v1759_v29 }
 0x226   : > { %v1612_v48 = vadd.f32 %v1611_v47, %v1418_v45  ;;  %v1613_v51 = vpop.f32.mrb[61].mxu0  ;;  %v1422_v53 = vpop.f32.mrb[62].mxu1  ;;  %v1988_v45 = vadd.f32 (!%p2462_p6), %v1924_v8, %v1828_v37  ;;  %v1990_v47 = vadd.f32 (!%p2462_p6), %v1926_v15, %v1830_v39  ;;  %v1771_v39 = vld [vmem:[#allocation2 + $0x98] sm:$0xff] (!%p2462_p6) }
 0x227   : > { %v1614_v52 = vadd.f32 %v1613_v51, %v1420_v49  ;;  %v1615_v55 = vpop.f32.mrb[62].mxu0  ;;  %v1424_v58 = vpop.f32.mrb[63].mxu1  ;;  %1751 = sbr.rel (%p2462_p6) target bundleno = 616 (0x268), region = 56  ;;  %v1760_v49 = vld [vmem:[#allocation2 + $0x40] sm:$0xff] (!%p2462_p6)  ;;  %v1762_v51 = vld [vmem:[#allocation2 + $0x50] sm:$0xff] (!%p2462_p6) }
 0x228   : > { %v1680_v56 = vadd.f32 %v1612_v48, %v462_v46  ;;  %v1616_v57 = vadd.f32 %v1615_v55, %v1422_v53  ;;  %v1617_v60 = vpop.f32.mrb[63].mxu0  ;;  %v1989_v46 = vadd.f32 (!%p2462_p6), %v1925_v10, %v1829_v38  ;;  %v1991_v48 = vadd.f32 (!%p2462_p6), %v1927_v17, %v1831_v40  ;;  %v1901_v38 = vld [vmem:[#allocation8 + $0x48] sm:$0xff] (!%p2462_p6) }
 0x229   : > { %v1681_v61 = vadd.f32 %v1614_v52, %v463_v50  ;;  %v1618_v62 = vadd.f32 %v1617_v60, %v1424_v58  ;;  %v1761_v50 = vld [vmem:[#allocation2 + $0x48] sm:$0xff] (!%p2462_p6)  ;;  %v1992_v52 = vadd.f32 (!%p2462_p6), %v1928_v20, %v1832_v41  ;;  %v1993_v53 = vadd.f32 (!%p2462_p6), %v1929_v22, %v1833_v42 }
 0x22a   : > { %1744 = vst [vmem:[#allocation2 + $0x1e0] sm:$0xff] %v1680_v56  ;;  %v1682_v63 = vadd.f32 %v1616_v57, %v464_v54  ;;  %v1994_v54 = vadd.f32 (!%p2462_p6), %v1930_v23, %v1834_v43  ;;  %v1995_v55 = vadd.f32 (!%p2462_p6), %v1931_v24, %v1835_v44  ;;  %v1763_v56 = vld [vmem:[#allocation2 + $0x58] sm:$0xff] (!%p2462_p6)  ;;  %v1764_v57 = vld [vmem:[#allocation2 + $0x60] sm:$0xff] (!%p2462_p6)  ;;  %v1765_v58 = vld [vmem:[#allocation2 + $0x68] sm:$0xff] (!%p2462_p6)  ;;  %v2053_v60 = vmax.f32 (!%p2462_p6), %v1989_v46, 0.0 }
 0x22b   : > { %1745 = vst [vmem:[#allocation2 + $0x1e8] sm:$0xff] %v1681_v61  ;;  %v1683_v0 = vadd.f32 %v1618_v62, %v465_v59  ;;  %v2052_v59 = vmax.f32 (!%p2462_p6), %v1988_v45, 0.0  ;;  %v2054_v61 = vmax.f32 (!%p2462_p6), %v1990_v47, 0.0  ;;  %v2055_v62 = vmax.f32 (!%p2462_p6), %v1991_v48, 0.0  ;;  %v1900_v23 = vld [vmem:[#allocation8 + $0x40] sm:$0xff] (!%p2462_p6)  ;;  %v1769_v24 = vld [vmem:[#allocation2 + $0x88] sm:$0xff] (!%p2462_p6) }
 0x22c   : > { %1746 = vst [vmem:[#allocation2 + $0x1f0] sm:$0xff] %v1682_v63  ;;  %v1766_v63 = vld [vmem:[#allocation2 + $0x70] sm:$0xff] (!%p2462_p6)  ;;  %v2056_v1 = vmax.f32 (!%p2462_p6), %v1992_v52, 0.0  ;;  %v2057_v2 = vmax.f32 (!%p2462_p6), %v1993_v53, 0.0  ;;  %v2058_v3 = vmax.f32 (!%p2462_p6), %v1994_v54, 0.0  ;;  %v2059_v4 = vmax.f32 (!%p2462_p6), %v1995_v55, 0.0 }
 0x22d   : > { %1747 = vst [vmem:[#allocation2 + $0x1f8] sm:$0xff] %v1683_v0  ;;  %v1899_v0 = vld [vmem:[#allocation8 + $0x38] sm:$0xff] (!%p2462_p6)  ;;  %2116 = vst [vmem:[#allocation9] sm:$0xff] (!%p2462_p6), %v2052_v59  ;;  %v1836_v5 = vadd.f32 (!%p2462_p6), %v3420_v26, %v1760_v49  ;;  %v1837_v6 = vadd.f32 (!%p2462_p6), %v3422_v27, %v1761_v50  ;;  %v1838_v7 = vadd.f32 (!%p2462_p6), %v3420_v26, %v1762_v51  ;;  %v1941_v42 = vunpack.c.h.bf16 (!%p2462_p6), %v1900_v23  ;;  %v1902_v43 = vld [vmem:[#allocation8 + $0x50] sm:$0xff] (!%p2462_p6) }
 0x22e   : > { %2117 = vst [vmem:[#allocation9 + $0x8] sm:$0xff] %v2053_v60  ;;  %2118 = vst [vmem:[#allocation9 + $0x10] sm:$0xff] %v2054_v61  ;;  %v1839_v8 = vadd.f32 %v3422_v27, %v1763_v56  ;;  %v1840_v10 = vadd.f32 %v3420_v26, %v1764_v57  ;;  %v1841_v11 = vadd.f32 %v3422_v27, %v1765_v58  ;;  %v1938_v13 = vunpack.c.l.bf16 %v1899_v0  ;;  %v1773_v44 = vld [vmem:[#allocation2 + $0xa8] sm:$0xff]  ;;  %v1774_v53 = vld [vmem:[#allocation2 + $0xb0] sm:$0xff] }
 0x22f   : > { %2119 = vst [vmem:[#allocation9 + $0x18] sm:$0xff] %v2055_v62  ;;  %2120 = vst [vmem:[#allocation9 + $0x20] sm:$0xff] %v2056_v1  ;;  %v1842_v12 = vadd.f32 %v3420_v26, %v1766_v63  ;;  %v1996_v14 = vadd.f32 %v1932_v30, %v1836_v5  ;;  %v1997_v15 = vadd.f32 %v1933_v31, %v1837_v6  ;;  %v1942_v47 = vunpack.c.l.bf16 %v1901_v38  ;;  %v1903_v54 = vld [vmem:[#allocation8 + $0x58] sm:$0xff]  ;;  %v1904_v1 = vld [vmem:[#allocation8 + $0x60] sm:$0xff] }
 0x230   : > { %2121 = vst [vmem:[#allocation9 + $0x28] sm:$0xff] %v2057_v2  ;;  %2122 = vst [vmem:[#allocation9 + $0x30] sm:$0xff] %v2058_v3  ;;  %v1998_v16 = vadd.f32 %v1934_v33, %v1838_v7  ;;  %v1999_v17 = vadd.f32 %v1935_v34, %v1839_v8  ;;  %v2000_v19 = vadd.f32 %v1936_v35, %v1840_v10  ;;  %v1939_v33 = vunpack.c.h.bf16 %v1899_v0  ;;  %v1772_v34 = vld [vmem:[#allocation2 + $0xa0] sm:$0xff]  ;;  %v1775_v59 = vld [vmem:[#allocation2 + $0xb8] sm:$0xff] }
 0x231   : > { %2123 = vst [vmem:[#allocation9 + $0x38] sm:$0xff] %v2059_v4  ;;  %v2001_v20 = vadd.f32 %v1937_v36, %v1841_v11  ;;  %v2002_v21 = vadd.f32 %v1938_v13, %v1842_v12  ;;  %v1843_v22 = vadd.f32 %v3422_v27, %v1767_v9  ;;  %v2060_v28 = vmax.f32 %v1996_v14, 0.0  ;;  %v1776_v0 = vld [vmem:[#allocation2 + $0xc0] sm:$0xff]  ;;  %v1777_v6 = vld [vmem:[#allocation2 + $0xc8] sm:$0xff]  ;;  %v1778_v11 = vld [vmem:[#allocation2 + $0xd0] sm:$0xff] }
 0x232   : > { %v2061_v29 = vmax.f32 %v1997_v15, 0.0  ;;  %v2062_v32 = vmax.f32 %v1998_v16, 0.0  ;;  %v2063_v37 = vmax.f32 %v1999_v17, 0.0  ;;  %v2064_v40 = vmax.f32 %v2000_v19, 0.0  ;;  %v1905_v12 = vld [vmem:[#allocation8 + $0x68] sm:$0xff]  ;;  %v1779_v17 = vld [vmem:[#allocation2 + $0xd8] sm:$0xff] }
 0x233   : > { %v2065_v30 = vmax.f32 %v2001_v20, 0.0  ;;  %v2066_v31 = vmax.f32 %v2002_v21, 0.0  ;;  %2124 = vst [vmem:[#allocation9 + $0x40] sm:$0xff] %v2060_v28  ;;  %v1844_v35 = vadd.f32 %v3420_v26, %v1768_v18  ;;  %v1940_v36 = vunpack.c.l.bf16 %v1900_v23  ;;  %v1906_v23 = vld [vmem:[#allocation8 + $0x70] sm:$0xff] }
 0x234   : > { %2125 = vst [vmem:[#allocation9 + $0x48] sm:$0xff] %v2061_v29  ;;  %2126 = vst [vmem:[#allocation9 + $0x50] sm:$0xff] %v2062_v32  ;;  %v1845_v41 = vadd.f32 %v3422_v27, %v1769_v24  ;;  %v2003_v45 = vadd.f32 %v1939_v33, %v1843_v22  ;;  %v1846_v46 = vadd.f32 %v3420_v26, %v1770_v25  ;;  %v1943_v51 = vunpack.c.h.bf16 %v1901_v38  ;;  %v1780_v22 = vld [vmem:[#allocation2 + $0xe0] sm:$0xff]  ;;  %v1781_v32 = vld [vmem:[#allocation2 + $0xe8] sm:$0xff] }
 0x235   : > { %2127 = vst [vmem:[#allocation9 + $0x58] sm:$0xff] %v2063_v37  ;;  %2128 = vst [vmem:[#allocation9 + $0x60] sm:$0xff] %v2064_v40  ;;  %v1847_v48 = vadd.f32 %v3422_v27, %v1771_v39  ;;  %v2004_v49 = vadd.f32 %v1940_v36, %v1844_v35  ;;  %v1848_v52 = vadd.f32 %v3420_v26, %v1772_v34  ;;  %v1944_v57 = vunpack.c.l.bf16 %v1902_v43 }
 0x236   : > { %2129 = vst [vmem:[#allocation9 + $0x68] sm:$0xff] %v2065_v30  ;;  %2130 = vst [vmem:[#allocation9 + $0x70] sm:$0xff] %v2066_v31  ;;  %v2005_v50 = vadd.f32 %v1941_v42, %v1845_v41  ;;  %v2067_v55 = vmax.f32 %v2003_v45, 0.0  ;;  %v2006_v56 = vadd.f32 %v1942_v47, %v1846_v46  ;;  %v1849_v58 = vadd.f32 %v3422_v27, %v1773_v44  ;;  %v1782_v30 = vld [vmem:[#allocation2 + $0xf0] sm:$0xff]  ;;  %v1907_v31 = vld [vmem:[#allocation8 + $0x78] sm:$0xff] }
 0x237   : > { %v2068_v60 = vmax.f32 %v2004_v49, 0.0  ;;  %v2007_v62 = vadd.f32 %v1943_v51, %v1847_v48  ;;  %v1945_v63 = vunpack.c.h.bf16 %v1902_v43  ;;  %v2008_v3 = vadd.f32 %v1944_v57, %v1848_v52  ;;  %v1783_v41 = vld [vmem:[#allocation2 + $0xf8] sm:$0xff]  ;;  %v1784_v46 = vld [vmem:[#allocation2 + $0x100] sm:$0xff]  ;;  %v1785_v52 = vld [vmem:[#allocation2 + $0x108] sm:$0xff] }
 0x238   : > { %v2069_v61 = vmax.f32 %v2005_v50, 0.0  ;;  %2131 = vst [vmem:[#allocation9 + $0x78] sm:$0xff] %v2067_v55  ;;  %v2070_v2 = vmax.f32 %v2006_v56, 0.0  ;;  %v1850_v4 = vadd.f32 %v3420_v26, %v1774_v53  ;;  %v1946_v5 = vunpack.c.l.bf16 %v1903_v54  ;;  %v1908_v47 = vld [vmem:[#allocation8 + $0x80] sm:$0xff]  ;;  %v1786_v57 = vld [vmem:[#allocation2 + $0x110] sm:$0xff] }
 0x239   : > { %2132 = vst [vmem:[#allocation9 + $0x80] sm:$0xff] %v2068_v60  ;;  %v2071_v7 = vmax.f32 %v2007_v62, 0.0  ;;  %v2009_v8 = vadd.f32 %v1945_v63, %v1849_v58  ;;  %v1851_v9 = vadd.f32 %v3422_v27, %v1775_v59  ;;  %v1947_v10 = vunpack.c.h.bf16 %v1903_v54  ;;  %v1909_v58 = vld [vmem:[#allocation8 + $0x88] sm:$0xff]  ;;  %v1787_v63 = vld [vmem:[#allocation2 + $0x118] sm:$0xff] }
 0x23a   : > { %2133 = vst [vmem:[#allocation9 + $0x88] sm:$0xff] %v2069_v61  ;;  %2134 = vst [vmem:[#allocation9 + $0x90] sm:$0xff] %v2070_v2  ;;  %v2072_v13 = vmax.f32 %v2008_v3, 0.0  ;;  %v2010_v14 = vadd.f32 %v1946_v5, %v1850_v4  ;;  %v1852_v15 = vadd.f32 %v3420_v26, %v1776_v0  ;;  %v1948_v16 = vunpack.c.l.bf16 %v1904_v1  ;;  %v1788_v4 = vld [vmem:[#allocation2 + $0x120] sm:$0xff]  ;;  %v1910_v5 = vld [vmem:[#allocation8 + $0x90] sm:$0xff] }
 0x23b   : > { %2135 = vst [vmem:[#allocation9 + $0x98] sm:$0xff] %v2071_v7  ;;  %v2073_v18 = vmax.f32 %v2009_v8, 0.0  ;;  %v2011_v19 = vadd.f32 %v1947_v10, %v1851_v9  ;;  %v1853_v20 = vadd.f32 %v3422_v27, %v1777_v6  ;;  %v1949_v21 = vunpack.c.h.bf16 %v1904_v1  ;;  %v1789_v10 = vld [vmem:[#allocation2 + $0x128] sm:$0xff] }
 0x23c   : > { %2136 = vst [vmem:[#allocation9 + $0xa0] sm:$0xff] %v2072_v13  ;;  %v2074_v24 = vmax.f32 %v2010_v14, 0.0  ;;  %v2012_v25 = vadd.f32 %v1948_v16, %v1852_v15  ;;  %v1854_v28 = vadd.f32 %v3420_v26, %v1778_v11  ;;  %v1950_v29 = vunpack.c.l.bf16 %v1905_v12  ;;  %v1790_v15 = vld [vmem:[#allocation2 + $0x130] sm:$0xff]  ;;  %v1911_v16 = vld [vmem:[#allocation8 + $0x98] sm:$0xff] }
 0x23d   : > { %2137 = vst [vmem:[#allocation9 + $0xa8] sm:$0xff] %v2073_v18  ;;  %v2075_v37 = vmax.f32 %v2011_v19, 0.0  ;;  %v2013_v38 = vadd.f32 %v1949_v21, %v1853_v20  ;;  %v1855_v39 = vadd.f32 %v3422_v27, %v1779_v17  ;;  %v1951_v40 = vunpack.c.h.bf16 %v1905_v12  ;;  %v1791_v21 = vld [vmem:[#allocation2 + $0x138] sm:$0xff] }
 0x23e   : > { %2138 = vst [vmem:[#allocation9 + $0xb0] sm:$0xff] %v2074_v24  ;;  %v2076_v33 = vmax.f32 %v2012_v25, 0.0  ;;  %v2014_v34 = vadd.f32 %v1950_v29, %v1854_v28  ;;  %v1856_v35 = vadd.f32 %v3420_v26, %v1780_v22  ;;  %v1952_v36 = vunpack.c.l.bf16 %v1906_v23  ;;  %v1792_v28 = vld [vmem:[#allocation2 + $0x140] sm:$0xff] }
 0x23f   : > { %2139 = vst [vmem:[#allocation9 + $0xb8] sm:$0xff] %v2075_v37  ;;  %v2077_v42 = vmax.f32 %v2013_v38, 0.0  ;;  %v2015_v43 = vadd.f32 %v1951_v40, %v1855_v39  ;;  %v1857_v44 = vadd.f32 %v3422_v27, %v1781_v32  ;;  %v1953_v45 = vunpack.c.h.bf16 %v1906_v23  ;;  %v1912_v29 = vld [vmem:[#allocation8 + $0xa0] sm:$0xff]  ;;  %v1793_v40 = vld [vmem:[#allocation2 + $0x148] sm:$0xff] }
 0x240   : > { %2140 = vst [vmem:[#allocation9 + $0xc0] sm:$0xff] %v2076_v33  ;;  %v2078_v48 = vmax.f32 %v2014_v34, 0.0  ;;  %v2016_v49 = vadd.f32 %v1952_v36, %v1856_v35  ;;  %v1858_v50 = vadd.f32 %v3420_v26, %v1782_v30  ;;  %v1954_v51 = vunpack.c.l.bf16 %v1907_v31  ;;  %v1794_v35 = vld [vmem:[#allocation2 + $0x150] sm:$0xff]  ;;  %v1913_v36 = vld [vmem:[#allocation8 + $0xa8] sm:$0xff] }
 0x241   : > { %2141 = vst [vmem:[#allocation9 + $0xc8] sm:$0xff] %v2077_v42  ;;  %v2079_v53 = vmax.f32 %v2015_v43, 0.0  ;;  %v2017_v54 = vadd.f32 %v1953_v45, %v1857_v44  ;;  %v1859_v55 = vadd.f32 %v3422_v27, %v1783_v41  ;;  %v1955_v56 = vunpack.c.h.bf16 %v1907_v31  ;;  %v1795_v45 = vld [vmem:[#allocation2 + $0x158] sm:$0xff] }
 0x242   : > { %2142 = vst [vmem:[#allocation9 + $0xd0] sm:$0xff] %v2078_v48  ;;  %v2080_v59 = vmax.f32 %v2016_v49, 0.0  ;;  %v2018_v60 = vadd.f32 %v1954_v51, %v1858_v50  ;;  %v1860_v61 = vadd.f32 %v3420_v26, %v1784_v46  ;;  %v1956_v62 = vunpack.c.l.bf16 %v1908_v47  ;;  %v1796_v50 = vld [vmem:[#allocation2 + $0x160] sm:$0xff]  ;;  %v1914_v51 = vld [vmem:[#allocation8 + $0xb0] sm:$0xff] }
 0x243   : > { %2143 = vst [vmem:[#allocation9 + $0xd8] sm:$0xff] %v2079_v53  ;;  %v2081_v0 = vmax.f32 %v2017_v54, 0.0  ;;  %v2019_v1 = vadd.f32 %v1955_v56, %v1859_v55  ;;  %v1861_v2 = vadd.f32 %v3422_v27, %v1785_v52  ;;  %v1957_v3 = vunpack.c.h.bf16 %v1908_v47  ;;  %v1797_v56 = vld [vmem:[#allocation2 + $0x168] sm:$0xff] }
 0x244   : > { %2144 = vst [vmem:[#allocation9 + $0xe0] sm:$0xff] %v2080_v59  ;;  %v2082_v6 = vmax.f32 %v2018_v60, 0.0  ;;  %v2020_v7 = vadd.f32 %v1956_v62, %v1860_v61  ;;  %v1862_v8 = vadd.f32 %v3420_v26, %v1786_v57  ;;  %v1958_v9 = vunpack.c.l.bf16 %v1909_v58  ;;  %v1798_v61 = vld [vmem:[#allocation2 + $0x170] sm:$0xff]  ;;  %v1915_v62 = vld [vmem:[#allocation8 + $0xb8] sm:$0xff] }
 0x245   : > { %2145 = vst [vmem:[#allocation9 + $0xe8] sm:$0xff] %v2081_v0  ;;  %v2083_v11 = vmax.f32 %v2019_v1, 0.0  ;;  %v2021_v12 = vadd.f32 %v1957_v3, %v1861_v2  ;;  %v1863_v13 = vadd.f32 %v3422_v27, %v1787_v63  ;;  %v1959_v14 = vunpack.c.h.bf16 %v1909_v58  ;;  %v1799_v3 = vld [vmem:[#allocation2 + $0x178] sm:$0xff] }
 0x246   : > { %2146 = vst [vmem:[#allocation9 + $0xf0] sm:$0xff] %v2082_v6  ;;  %v2084_v17 = vmax.f32 %v2020_v7, 0.0  ;;  %v2022_v18 = vadd.f32 %v1958_v9, %v1862_v8  ;;  %v1864_v19 = vadd.f32 %v3420_v26, %v1788_v4  ;;  %v1960_v20 = vunpack.c.l.bf16 %v1910_v5  ;;  %v1800_v8 = vld [vmem:[#allocation2 + $0x180] sm:$0xff] }
 0x247   : > { %2147 = vst [vmem:[#allocation9 + $0xf8] sm:$0xff] %v2083_v11  ;;  %v2085_v22 = vmax.f32 %v2021_v12, 0.0  ;;  %v2023_v23 = vadd.f32 %v1959_v14, %v1863_v13  ;;  %v1865_v24 = vadd.f32 %v3422_v27, %v1789_v10  ;;  %v1961_v25 = vunpack.c.h.bf16 %v1910_v5  ;;  %v1916_v9 = vld [vmem:[#allocation8 + $0xc0] sm:$0xff]  ;;  %v1801_v14 = vld [vmem:[#allocation2 + $0x188] sm:$0xff] }
 0x248   : > { %2148 = vst [vmem:[#allocation9 + $0x100] sm:$0xff] %v2084_v17  ;;  %v2086_v32 = vmax.f32 %v2022_v18, 0.0  ;;  %v2024_v37 = vadd.f32 %v1960_v20, %v1864_v19  ;;  %v1866_v38 = vadd.f32 %v3420_v26, %v1790_v15  ;;  %v1962_v39 = vunpack.c.l.bf16 %v1911_v16  ;;  %v1802_v19 = vld [vmem:[#allocation2 + $0x190] sm:$0xff]  ;;  %v1917_v20 = vld [vmem:[#allocation8 + $0xc8] sm:$0xff] }
 0x249   : > { %2149 = vst [vmem:[#allocation9 + $0x108] sm:$0xff] %v2085_v22  ;;  %v2087_v30 = vmax.f32 %v2023_v23, 0.0  ;;  %v2025_v31 = vadd.f32 %v1961_v25, %v1865_v24  ;;  %v1867_v33 = vadd.f32 %v3422_v27, %v1791_v21  ;;  %v1963_v34 = vunpack.c.h.bf16 %v1911_v16  ;;  %v1803_v25 = vld [vmem:[#allocation2 + $0x198] sm:$0xff] }
 0x24a   : > { %2150 = vst [vmem:[#allocation9 + $0x110] sm:$0xff] %v2086_v32  ;;  %v2088_v41 = vmax.f32 %v2024_v37, 0.0  ;;  %v2026_v42 = vadd.f32 %v1962_v39, %v1866_v38  ;;  %v1868_v43 = vadd.f32 %v3420_v26, %v1792_v28  ;;  %v1964_v44 = vunpack.c.l.bf16 %v1912_v29  ;;  %v1804_v38 = vld [vmem:[#allocation2 + $0x1a0] sm:$0xff]  ;;  %v1918_v39 = vld [vmem:[#allocation8 + $0xd0] sm:$0xff] }
 0x24b   : > { %2151 = vst [vmem:[#allocation9 + $0x118] sm:$0xff] %v2087_v30  ;;  %v2089_v46 = vmax.f32 %v2025_v31, 0.0  ;;  %v2027_v47 = vadd.f32 %v1963_v34, %v1867_v33  ;;  %v1869_v48 = vadd.f32 %v3422_v27, %v1793_v40  ;;  %v1965_v49 = vunpack.c.h.bf16 %v1912_v29  ;;  %v1805_v34 = vld [vmem:[#allocation2 + $0x1a8] sm:$0xff] }
 0x24c   : > { %2152 = vst [vmem:[#allocation9 + $0x120] sm:$0xff] %v2088_v41  ;;  %v2090_v52 = vmax.f32 %v2026_v42, 0.0  ;;  %v2028_v53 = vadd.f32 %v1964_v44, %v1868_v43  ;;  %v1870_v54 = vadd.f32 %v3420_v26, %v1794_v35  ;;  %v1966_v55 = vunpack.c.l.bf16 %v1913_v36  ;;  %v1806_v43 = vld [vmem:[#allocation2 + $0x1b0] sm:$0xff]  ;;  %v1919_v44 = vld [vmem:[#allocation8 + $0xd8] sm:$0xff] }
 0x24d   : > { %2153 = vst [vmem:[#allocation9 + $0x128] sm:$0xff] %v2089_v46  ;;  %v2091_v57 = vmax.f32 %v2027_v47, 0.0  ;;  %v2029_v58 = vadd.f32 %v1965_v49, %v1869_v48  ;;  %v1871_v59 = vadd.f32 %v3422_v27, %v1795_v45  ;;  %v1967_v60 = vunpack.c.h.bf16 %v1913_v36  ;;  %v1807_v49 = vld [vmem:[#allocation2 + $0x1b8] sm:$0xff] }
 0x24e   : > { %2154 = vst [vmem:[#allocation9 + $0x130] sm:$0xff] %v2090_v52  ;;  %v2092_v63 = vmax.f32 %v2028_v53, 0.0  ;;  %v2030_v0 = vadd.f32 %v1966_v55, %v1870_v54  ;;  %v1872_v1 = vadd.f32 %v3420_v26, %v1796_v50  ;;  %v1968_v2 = vunpack.c.l.bf16 %v1914_v51  ;;  %v1808_v54 = vld [vmem:[#allocation2 + $0x1c0] sm:$0xff] }
 0x24f   : > { %2155 = vst [vmem:[#allocation9 + $0x138] sm:$0xff] %v2091_v57  ;;  %v2093_v4 = vmax.f32 %v2029_v58, 0.0  ;;  %v2031_v5 = vadd.f32 %v1967_v60, %v1871_v59  ;;  %v1873_v6 = vadd.f32 %v3422_v27, %v1797_v56  ;;  %v1969_v7 = vunpack.c.h.bf16 %v1914_v51  ;;  %v1920_v55 = vld [vmem:[#allocation8 + $0xe0] sm:$0xff]  ;;  %v1809_v60 = vld [vmem:[#allocation2 + $0x1c8] sm:$0xff] }
 0x250   : > { %2156 = vst [vmem:[#allocation9 + $0x140] sm:$0xff] %v2092_v63  ;;  %v2094_v10 = vmax.f32 %v2030_v0, 0.0  ;;  %v2032_v11 = vadd.f32 %v1968_v2, %v1872_v1  ;;  %v1874_v12 = vadd.f32 %v3420_v26, %v1798_v61  ;;  %v1970_v13 = vunpack.c.l.bf16 %v1915_v62  ;;  %v1810_v1 = vld [vmem:[#allocation2 + $0x1d0] sm:$0xff]  ;;  %v1921_v2 = vld [vmem:[#allocation8 + $0xe8] sm:$0xff] }
 0x251   : > { %2157 = vst [vmem:[#allocation9 + $0x148] sm:$0xff] %v2093_v4  ;;  %v2095_v15 = vmax.f32 %v2031_v5, 0.0  ;;  %v2033_v16 = vadd.f32 %v1969_v7, %v1873_v6  ;;  %v1875_v17 = vadd.f32 %v3422_v27, %v1799_v3  ;;  %v1971_v18 = vunpack.c.h.bf16 %v1915_v62  ;;  %v1811_v7 = vld [vmem:[#allocation2 + $0x1d8] sm:$0xff] }
 0x252   : > { %2158 = vst [vmem:[#allocation9 + $0x150] sm:$0xff] %v2094_v10  ;;  %v2096_v21 = vmax.f32 %v2032_v11, 0.0  ;;  %v2034_v22 = vadd.f32 %v1970_v13, %v1874_v12  ;;  %v1876_v23 = vadd.f32 %v3420_v26, %v1800_v8  ;;  %v1972_v24 = vunpack.c.l.bf16 %v1916_v9  ;;  %v1812_v12 = vld [vmem:[#allocation2 + $0x1e0] sm:$0xff]  ;;  %v1922_v13 = vld [vmem:[#allocation8 + $0xf0] sm:$0xff] }
 0x253   : > { %2159 = vst [vmem:[#allocation9 + $0x158] sm:$0xff] %v2095_v15  ;;  %v2097_v28 = vmax.f32 %v2033_v16, 0.0  ;;  %v2035_v29 = vadd.f32 %v1971_v18, %v1875_v17  ;;  %v1877_v32 = vadd.f32 %v3422_v27, %v1801_v14  ;;  %v1973_v37 = vunpack.c.h.bf16 %v1916_v9  ;;  %v1813_v18 = vld [vmem:[#allocation2 + $0x1e8] sm:$0xff] }
 0x254   : > { %2160 = vst [vmem:[#allocation9 + $0x160] sm:$0xff] %v2096_v21  ;;  %v2098_v40 = vmax.f32 %v2034_v22, 0.0  ;;  %v2036_v30 = vadd.f32 %v1972_v24, %v1876_v23  ;;  %v1878_v31 = vadd.f32 %v3420_v26, %v1802_v19  ;;  %v1974_v33 = vunpack.c.l.bf16 %v1917_v20  ;;  %v1814_v23 = vld [vmem:[#allocation2 + $0x1f0] sm:$0xff]  ;;  %v1923_v24 = vld [vmem:[#allocation8 + $0xf8] sm:$0xff] }
 0x255   : > { %2161 = vst [vmem:[#allocation9 + $0x168] sm:$0xff] %v2097_v28  ;;  %v2099_v35 = vmax.f32 %v2035_v29, 0.0  ;;  %v2037_v36 = vadd.f32 %v1973_v37, %v1877_v32  ;;  %v1879_v41 = vadd.f32 %v3422_v27, %v1803_v25  ;;  %v1975_v42 = vunpack.c.h.bf16 %v1917_v20  ;;  %v1815_v37 = vld [vmem:[#allocation2 + $0x1f8] sm:$0xff] }
 0x256   : > { %2162 = vst [vmem:[#allocation9 + $0x170] sm:$0xff] %v2098_v40  ;;  %v2100_v45 = vmax.f32 %v2036_v30, 0.0  ;;  %v2038_v46 = vadd.f32 %v1974_v33, %v1878_v31  ;;  %v1880_v47 = vadd.f32 %v3420_v26, %v1804_v38  ;;  %v1976_v48 = vunpack.c.l.bf16 %v1918_v39 }
 0x257   : > { %2163 = vst [vmem:[#allocation9 + $0x178] sm:$0xff] %v2099_v35  ;;  %v2101_v50 = vmax.f32 %v2037_v36, 0.0  ;;  %v2039_v51 = vadd.f32 %v1975_v42, %v1879_v41  ;;  %v1881_v52 = vadd.f32 %v3422_v27, %v1805_v34  ;;  %v1977_v53 = vunpack.c.h.bf16 %v1918_v39 }
 0x258   : > { %2164 = vst [vmem:[#allocation9 + $0x180] sm:$0xff] %v2100_v45  ;;  %v2102_v56 = vmax.f32 %v2038_v46, 0.0  ;;  %v2040_v57 = vadd.f32 %v1976_v48, %v1880_v47  ;;  %v1882_v58 = vadd.f32 %v3420_v26, %v1806_v43  ;;  %v1978_v59 = vunpack.c.l.bf16 %v1919_v44 }
 0x259   : > { %2165 = vst [vmem:[#allocation9 + $0x188] sm:$0xff] %v2101_v50  ;;  %v2103_v61 = vmax.f32 %v2039_v51, 0.0  ;;  %v2041_v62 = vadd.f32 %v1977_v53, %v1881_v52  ;;  %v1883_v63 = vadd.f32 %v3422_v27, %v1807_v49  ;;  %v1979_v0 = vunpack.c.h.bf16 %v1919_v44 }
 0x25a   : > { %2166 = vst [vmem:[#allocation9 + $0x190] sm:$0xff] %v2102_v56  ;;  %v2104_v3 = vmax.f32 %v2040_v57, 0.0  ;;  %v2042_v4 = vadd.f32 %v1978_v59, %v1882_v58  ;;  %v1884_v5 = vadd.f32 %v3420_v26, %v1808_v54  ;;  %v1980_v6 = vunpack.c.l.bf16 %v1920_v55 }
 0x25b   : > { %2167 = vst [vmem:[#allocation9 + $0x198] sm:$0xff] %v2103_v61  ;;  %v2105_v8 = vmax.f32 %v2041_v62, 0.0  ;;  %v2043_v9 = vadd.f32 %v1979_v0, %v1883_v63  ;;  %v1885_v10 = vadd.f32 %v3422_v27, %v1809_v60  ;;  %v1981_v11 = vunpack.c.h.bf16 %v1920_v55 }
 0x25c   : > { %2168 = vst [vmem:[#allocation9 + $0x1a0] sm:$0xff] %v2104_v3  ;;  %v2106_v14 = vmax.f32 %v2042_v4, 0.0  ;;  %v2044_v15 = vadd.f32 %v1980_v6, %v1884_v5  ;;  %v1886_v16 = vadd.f32 %v3420_v26, %v1810_v1  ;;  %v1982_v17 = vunpack.c.l.bf16 %v1921_v2 }
 0x25d   : > { %2169 = vst [vmem:[#allocation9 + $0x1a8] sm:$0xff] %v2105_v8  ;;  %v2107_v19 = vmax.f32 %v2043_v9, 0.0  ;;  %v2045_v20 = vadd.f32 %v1981_v11, %v1885_v10  ;;  %v1887_v21 = vadd.f32 %v3422_v27, %v1811_v7  ;;  %v1983_v22 = vunpack.c.h.bf16 %v1921_v2 }
 0x25e   : > { %2170 = vst [vmem:[#allocation9 + $0x1b0] sm:$0xff] %v2106_v14  ;;  %v2108_v25 = vmax.f32 %v2044_v15, 0.0  ;;  %v2046_v28 = vadd.f32 %v1982_v17, %v1886_v16  ;;  %v1888_v29 = vadd.f32 %v3420_v26, %v1812_v12  ;;  %v1984_v32 = vunpack.c.l.bf16 %v1922_v13 }
 0x25f   : > { %2171 = vst [vmem:[#allocation9 + $0x1b8] sm:$0xff] %v2107_v19  ;;  %v2109_v38 = vmax.f32 %v2045_v20, 0.0  ;;  %v2047_v39 = vadd.f32 %v1983_v22, %v1887_v21  ;;  %v1889_v40 = vadd.f32 %v3422_v27, %v1813_v18  ;;  %v1985_v30 = vunpack.c.h.bf16 %v1922_v13 }
 0x260   : > { %2172 = vst [vmem:[#allocation9 + $0x1c0] sm:$0xff] %v2108_v25  ;;  %v2110_v31 = vmax.f32 %v2046_v28, 0.0  ;;  %v2048_v33 = vadd.f32 %v1984_v32, %v1888_v29  ;;  %v1890_v34 = vadd.f32 %v3420_v26, %v1814_v23  ;;  %v1986_v35 = vunpack.c.l.bf16 %v1923_v24 }
 0x261   : > { %2173 = vst [vmem:[#allocation9 + $0x1c8] sm:$0xff] %v2109_v38  ;;  %v2111_v36 = vmax.f32 %v2047_v39, 0.0  ;;  %v2049_v41 = vadd.f32 %v1985_v30, %v1889_v40  ;;  %v1891_v42 = vadd.f32 %v3422_v27, %v1815_v37  ;;  %v1987_v43 = vunpack.c.h.bf16 %v1923_v24 }
 0x262   : > { %2174 = vst [vmem:[#allocation9 + $0x1d0] sm:$0xff] %v2110_v31  ;;  %v2112_v44 = vmax.f32 %v2048_v33, 0.0  ;;  %v2050_v45 = vadd.f32 %v1986_v35, %v1890_v34 }
 0x263   : > { %2175 = vst [vmem:[#allocation9 + $0x1d8] sm:$0xff] %v2111_v36  ;;  %v2113_v46 = vmax.f32 %v2049_v41, 0.0  ;;  %v2051_v47 = vadd.f32 %v1987_v43, %v1891_v42 }
 0x264   : > { %2176 = vst [vmem:[#allocation9 + $0x1e0] sm:$0xff] %v2112_v44  ;;  %v2114_v48 = vmax.f32 %v2050_v45, 0.0 }
 0x265   : > { %2177 = vst [vmem:[#allocation9 + $0x1e8] sm:$0xff] %v2113_v46  ;;  %v2115_v49 = vmax.f32 %v2051_v47, 0.0 }
 0x266   : > { %2178 = vst [vmem:[#allocation9 + $0x1f0] sm:$0xff] %v2114_v48 }
 0x267   : > { %2179 = vst [vmem:[#allocation9 + $0x1f8] sm:$0xff] %v2115_v49 }
 0x268 PF: > { %p2560_p8 = scmp.eq.s32.totalorder %s3056_s21, 1  ;;  %s2999_s18 = smov [#allocation9]  }
 0x269   : > { %s2192_s13 = sshll.u32 %s2999_s18, 4  ;;  %s2193_s13 = int_to_ptr.vmem [resolvable:$true] %s2192_s13 }
 0x26a   : > { %s2900_s30 = scalar_lea.vmem %s2193_s13, 8192  ;;  %p2907_p0 = scmp.lt.s32.totalorder %s2193_s13, %s2193_s13 }
 0x26b   : > { %p2901_p13 = scmp.ne.s32.totalorder %s2193_s13, %s2900_s30  ;;  %p2908_p4 = scmp.lt.s32.totalorder %s2900_s30, %s2900_s30 }
 0x26d   : > { %p2902_p1 = pnand %p2901_p13, %p2560_p8  ;;  %p2909_p7 = por %p2908_p4, %p2907_p0 }
 0x26f   : > { %p2903_p2 = pneg %p2902_p1 }
 0x271   : > { %p2910_p9 = pnand %p2909_p7, %p2903_p2 }
 0x273   : > { %2913 = shalt.err (!%p2910_p9)
}
 0x274   : > { %s2914_s11 = scalar_lea.hbm %s3537_s4, 8192 }
 0x275   : > { %p2915_p12 = scmp.ne.s32.totalorder %s3537_s4, %s2914_s11  ;;  %p2920_p10 = scmp.lt.u32.totalorder %s2914_s11, %s3537_s4 }
 0x277   : > { %p2916_p5 = pnand %p2915_p12, %p2560_p8 }
 0x279   : > { %p2917_p11 = pneg %p2916_p5 }
 0x27b   : > { %p2922_p3 = pnand %p2920_p10, %p2917_p11 }
 0x27d   : > { %2925 = shalt.err (!%p2922_p3)
}
 0x27e   : > { %s3000_s26 = smov 256   ;;  %s3001_s25 = smov 16  }
 0x27f   : > { %2543 = dma.vmem_to_hbm [thread:$0]  (%p2560_p8), %s2193_s13, 8192, %s3537_s4, [#allocation5], %s3000_s26, %s3000_s26, %s3001_s25  }
 0x280   : > { %2963 = dma.done.wait (%p2560_p8), [#allocation5], 8192  }
 0x281   : > { %2965 = vsyncadd (%p2560_p8), [#allocation5], 4294959104 }
 0x282 PF: > { %s21_s20 = sadd.s32 1, %s2988_s20   ;;  %s3557_s15 = smov %s2972_s16 }
 0x283   : > { %p18_p6 = scmp.ge.s32.totalorder %s21_s20, 4   ;;  %s3558_s16 = smov %s2976_s17 }
 0x284   : > { %s3559_s17 = smov %s3126_s10  ;;  %s3560_s18 = smov %s2984_s19 }
 0x285   : > { %s3561_s19 = smov %s3563_s29  ;;  %20 = sbr.rel (!%p18_p6) target bundleno = 9 (0x9), region = 103 }
 0x28c   :  { %2208 = vsyncpa [#allocation4], 1 }
 0x28d   :  { %2210 = vsyncpa [#allocation4 + $0x1], 1 }
 0x28e   :  { %2211 = vsyncpa [#allocation7], 1 }
 0x28f   :  { %2213 = vsyncpa [#allocation7 + $0x1], 1 }
 0x290   :  { %2214 = vsyncpa [#allocation5], 1 }
 0x291   :  { %2216 = vsyncpa [#allocation5 + $0x1], 1 }

</bundles_post_ra>
